<compile_context>
chip_gen: v5e
topology: v5e:2x2
jax: 0.10.0
libtpu: 0.0.40
codegen_flags: <defaults>
</compile_context>

<pallas_src>
import numpy as np
import jax
import jax.numpy as jnp
from jax import lax
from jax.experimental import pallas as pl
from jax.experimental.pallas import tpu as pltpu


def _residual_block_kernel(xp_ref, w1p_ref, w2p_ref, wsp_ref, bnp_ref, actp_ref,
                           outp_ref):
    bb, cin, s2 = xp_ref.shape
    s = s2 // 2
    cout = w2p_ref.shape[0]

    alpha = actp_ref[0]       # ComplexActivation.alpha
    act_beta = actp_ref[1]    # ComplexActivation.beta

    # ---- batch-independent loads / slices, hoisted once ----
    w1p = w1p_ref[...]                 # (Cin, Cout, 2S)
    w1r = w1p[:, :, :s]
    w1i = w1p[:, :, s:]
    w2p = w2p_ref[...]                 # (Cout, 2S)
    w2r = w2p[:, :s]
    w2i = w2p[:, s:]
    wsp = wsp_ref[...]                 # (Cout, 2*Cin)
    wsr = wsp[:, :cin]
    wsi = wsp[:, cin:]
    bnp = bnp_ref[...]                 # (Cout, 12)
    g1r, b1r, g2r, b2r, gsr, bsr = (bnp[:, k:k + 1] for k in range(6))
    g1i, b1i, g2i, b2i, gsi, bsi = (bnp[:, 6 + k:7 + k] for k in range(6))

    def cbn(zr, zi, gr, gi, br, bi):
        # FrequencyBatchNorm2D: per-(batch, channel) complex mean, real variance
        # var = mean(|z - mean|^2) (unbiased=False), then gamma*zn + beta.
        mr = jnp.mean(zr, axis=-1, keepdims=True)
        mi = jnp.mean(zi, axis=-1, keepdims=True)
        dr = zr - mr
        di = zi - mi
        var = jnp.mean(dr * dr + di * di, axis=-1, keepdims=True)
        inv = lax.rsqrt(var + 1e-5)            # single EUP op (no sqrt + div)
        nr = dr * inv
        ni = di * inv
        return gr * nr - gi * ni + br, gr * ni + gi * nr + bi

    def cact(zr, zi):
        # ComplexActivation: alpha*softplus(|z|) * exp(1j * beta*sin(angle(z)))
        # sin(angle(z)) == imag(z)/|z|; |z| and 1/|z| share one rsqrt.
        r2 = zr * zr + zi * zi
        inv = lax.rsqrt(r2 + 1e-30)
        mag = r2 * inv                          # ~ |z|  (exact 0 when z == 0)
        sin_phase = zi * inv                    # ~ sin(angle(z)), 0 when z == 0
        tm = alpha * (mag + jnp.log(1.0 + jnp.exp(-mag)))   # stable softplus
        tp = act_beta * sin_phase
        return tm * jnp.cos(tp), tm * jnp.sin(tp)

    for b in range(bb):                         # small static batch fold
        xp = xp_ref[b]                          # (Cin, 2S)
        xr = xp[:, :s]
        xi = xp[:, s:]

        # ---- conv1 (Cin contraction) and 1x1 shortcut, fused over ci ----
        c1r = jnp.zeros((cout, s), jnp.float32)
        c1i = jnp.zeros((cout, s), jnp.float32)
        scr = jnp.zeros((cout, s), jnp.float32)
        sci = jnp.zeros((cout, s), jnp.float32)
        for ci in range(cin):                   # static unroll, cin is small
            xr_c = xr[ci:ci + 1, :]             # (1, S)
            xi_c = xi[ci:ci + 1, :]
            wr_c = w1r[ci]                      # contiguous (Cout, S) tile
            wi_c = w1i[ci]
            c1r = c1r + xr_c * wr_c - xi_c * wi_c
            c1i = c1i + xr_c * wi_c + xi_c * wr_c
            swr = wsr[:, ci:ci + 1]             # (Cout, 1)
            swi = wsi[:, ci:ci + 1]
            scr = scr + swr * xr_c - swi * xi_c
            sci = sci + swr * xi_c + swi * xr_c
        # TODO(synk): at production Cin/Cout/S sizes, move these contractions
        # onto the MXU as 3 real dots (Gauss trick); at (8,4)x(4,64) VPU wins.

        # ---- bn1 + complex activation ----
        o1r, o1i = cbn(c1r, c1i, g1r, g1i, b1r, b1i)
        o1r, o1i = cact(o1r, o1i)

        # ---- conv2: per-channel elementwise complex multiply ----
        c2r = o1r * w2r - o1i * w2i
        c2i = o1r * w2i + o1i * w2r

        # ---- bn2 ----
        o2r, o2i = cbn(c2r, c2i, g2r, g2i, b2r, b2i)

        # ---- shortcut bn ----
        ssr, ssi = cbn(scr, sci, gsr, gsi, bsr, bsi)

        # ---- residual add + final activation ----
        fr, fi = cact(o2r + ssr, o2i + ssi)

        # single lane-dense (Cout, 128) store
        outp_ref[b] = jnp.concatenate([fr, fi], axis=-1)


def residual_block_forward(x_complex, params):
    """x_complex: numpy complex array of shape (B, Cin, H, W), NCHW like PyTorch."""
    x_complex = np.asarray(x_complex)
    B, Cin, H, W = x_complex.shape

    def to_full(filt, cout):
        # FrequencyConv2D stores (Cout, Cin, k, k) when cin != cout, otherwise
        # (C, k, k) meaning a purely per-channel multiply; expand the latter to
        # an equivalent diagonal (C, C, k, k) filter (pure glue).
        filt = np.asarray(filt)
        if filt.ndim == 4:
            return filt
        eye = np.eye(cout)
        return eye[:, :, None, None] * filt[:, None, :, :]

    w1 = to_full(params["w1"], np.asarray(params["w1"]).shape[0])
    Cout = w1.shape[0]
    ws = to_full(params["ws"], Cout)

    # Downsampling ([::2, ::2]) commutes with the elementwise frequency conv,
    # so apply it up-front to x and the conv1 filters (glue, not compute).
    if params["apply_downsample"]:
        x_ds = x_complex[:, :, ::2, ::2]
        w1_ds = w1[:, :, ::2, ::2]
    else:
        x_ds = x_complex
        w1_ds = w1
    H2, W2 = x_ds.shape[-2:]
    S = H2 * W2

    w2 = np.asarray(params["w2"])               # (Cout, H2, W2)
    assert w2.shape[-2:] == (H2, W2), "conv2 kernel must match post-conv1 spatial size"
    ws2d = ws[:, :, 0, 0]                       # (Cout, Cin)

    def pack(a, shape):
        # Pack real|imag along the last (lane) axis → lane-dense slabs.
        a = np.asarray(a).reshape(shape)
        return jnp.asarray(np.concatenate([a.real, a.imag], axis=-1), jnp.float32)

    xp = pack(x_ds, (B, Cin, S))                                        # (B, Cin, 2S)
    w1t = np.transpose(w1_ds.reshape(Cout, Cin, S), (1, 0, 2))          # (Cin, Cout, S)
    w1p = pack(w1t, (Cin, Cout, S))                                     # (Cin, Cout, 2S)
    w2p = pack(w2, (Cout, S))                                           # (Cout, 2S)
    wsp = pack(ws2d, (Cout, Cin))                                       # (Cout, 2Cin)

    bnp_c = np.stack([params["bn1_gamma"], params["bn1_beta"],
                      params["bn2_gamma"], params["bn2_beta"],
                      params["bns_gamma"], params["bns_beta"]], axis=1)  # (Cout, 6)
    bnp = pack(bnp_c, (Cout, 6))                                         # (Cout, 12)
    actp = jnp.asarray([params["alpha"], params["beta"]], jnp.float32)

    # Two parallel batch blocks (keeps both v7x TCs busy); batch is folded
    # inside each block so single-TC v5e/v6e pay at most 2 grid steps.
    NB = 2 if (B >= 2 and B % 2 == 0) else 1
    BB = B // NB

    outp = pl.pallas_call(
        _residual_block_kernel,
        out_shape=jax.ShapeDtypeStruct((B, Cout, 2 * S), jnp.float32),
        grid=(NB,),
        in_specs=[
            pl.BlockSpec((BB, Cin, 2 * S), lambda g: (g, 0, 0)),       # x packed
            pl.BlockSpec((Cin, Cout, 2 * S), lambda g: (0, 0, 0)),     # w1 packed
            pl.BlockSpec((Cout, 2 * S), lambda g: (0, 0)),             # w2 packed
            pl.BlockSpec((Cout, 2 * Cin), lambda g: (0, 0)),           # ws packed
            pl.BlockSpec((Cout, 12), lambda g: (0, 0)),                # bn packed
            pl.BlockSpec(memory_space=pltpu.MemorySpace.SMEM),         # (alpha, beta)
        ],
        out_specs=pl.BlockSpec((BB, Cout, 2 * S), lambda g: (g, 0, 0)),
        compiler_params=pltpu.CompilerParams(dimension_semantics=("parallel",)),
    )(xp, w1p, w2p, wsp, bnp, actp)

    out_r = outp[:, :, :S].reshape(B, Cout, H2, W2)
    out_i = outp[:, :, S:].reshape(B, Cout, H2, W2)
    return out_r, out_i


# --------------------- pure-numpy reference (mirrors PyTorch) ---------------------
def reference_forward(x, params):
    down = params["apply_downsample"]

    def freq_conv(inp, filt, downsample):
        filt = np.asarray(filt)
        if filt.ndim == 4:  # in_channels != out_channels
            out = np.sum(inp[:, None, :, :, :] * filt[None, :, :, :, :], axis=2)
        else:               # in_channels == out_channels (per-channel multiply)
            out = inp * filt[None, :, :, :]
        if downsample:
            out = out[:, :, ::2, ::2]
        return out

    def freq_bn(inp, gamma, beta):
        mean = np.mean(inp, axis=(-2, -1), keepdims=True)
        var = np.mean(np.abs(inp - mean) ** 2, axis=(-2, -1), keepdims=True)
        xn = (inp - mean) / np.sqrt(var + 1e-5)
        return gamma.reshape(1, -1, 1, 1) * xn + beta.reshape(1, -1, 1, 1)

    def act(z):
        mag = np.abs(z)
        ph = np.angle(z)
        tm = params["alpha"] * np.logaddexp(0.0, mag)     # softplus
        tp = params["beta"] * np.sin(ph)
        return tm * np.exp(1j * tp)

    out = freq_bn(freq_conv(x, params["w1"], down), params["bn1_gamma"], params["bn1_beta"])
    out = act(out)
    out = freq_bn(freq_conv(out, params["w2"], False), params["bn2_gamma"], params["bn2_beta"])
    sc = freq_bn(freq_conv(x, params["ws"], down), params["bns_gamma"], params["bns_beta"])
    out = out + sc
    out = act(out)
    return out


if __name__ == "__main__":
    # ResidualBlock(in_channels=4, out_channels=8, kernel_size=16, apply_downsample=True)
    # The "frequency conv" is an elementwise multiply, so kernel_size == H == W.
    B, Cin, Cout, K = 2, 4, 8, 16
    K2 = K // 2

    key = jax.random.PRNGKey(0)
    keys = jax.random.split(key, 4)

    def cnormal(k, shape, scale):
        kr, ki = jax.random.split(k)
        r = np.asarray(scale * jax.random.normal(kr, shape, dtype=jnp.float32))
        i = np.asarray(scale * jax.random.normal(ki, shape, dtype=jnp.float32))
        return r + 1j * i

    x = cnormal(keys[0], (B, Cin, K, K), 1.0)

    params = {
        "w1": cnormal(keys[1], (Cout, Cin, K, K), 0.2),   # conv1 (in != out branch)
        "w2": cnormal(keys[2], (Cout, K2, K2), 0.3),      # conv2 (in == out branch)
        "ws": cnormal(keys[3], (Cout, Cin, 1, 1), 0.5),   # shortcut 1x1 conv
        "bn1_gamma": np.ones(Cout, dtype=np.complex64),
        "bn1_beta": np.zeros(Cout, dtype=np.complex64),
        "bn2_gamma": np.ones(Cout, dtype=np.complex64),
        "bn2_beta": np.zeros(Cout, dtype=np.complex64),
        "bns_gamma": np.ones(Cout, dtype=np.complex64),
        "bns_beta": np.zeros(Cout, dtype=np.complex64),
        "alpha": 1.0,   # ComplexActivation(alpha_init=1.0, beta_init=0.5)
        "beta": 0.5,
        "apply_downsample": True,
    }

    out_r, out_i = residual_block_forward(x, params)
    out_r = jax.block_until_ready(out_r)
    out_i = jax.block_until_ready(out_i)

    ref = reference_forward(x, params)
    np.testing.assert_allclose(np.asarray(out_r), ref.real, rtol=2e-3, atol=2e-3)
    np.testing.assert_allclose(np.asarray(out_i), ref.imag, rtol=2e-3, atol=2e-3)

    print("KERNEL_OK")
</pallas_src>

<mosaic_0001>
module attributes {stable_mosaic.version = 11 : i64} {
  func.func @_residual_block_kernel(%arg0: i32, %arg1: memref<1x4x128xf32, #tpu.memory_space<vmem>>, %arg2: memref<4x8x128xf32, #tpu.memory_space<vmem>>, %arg3: memref<8x128xf32, #tpu.memory_space<vmem>>, %arg4: memref<8x8xf32, #tpu.memory_space<vmem>>, %arg5: memref<8x12xf32, #tpu.memory_space<vmem>>, %arg6: memref<2xf32, #tpu.memory_space<smem>>, %arg7: memref<1x8x128xf32, #tpu.memory_space<vmem>>) attributes {dimension_semantics = [#tpu.dimension_semantics<parallel>], iteration_bounds = array<i64: 2>, scalar_prefetch = 0 : i64, scratch_operands = 0 : i64, tpu.core_type = #tpu.core_type<tc>, window_params = [{transform_indices = @transform_0, window_bounds = array<i64: 1, 4, 128>}, {pipeline_mode = #tpu.pipeline_mode<synchronous>, transform_indices = @transform_1, window_bounds = array<i64: 4, 8, 128>}, {pipeline_mode = #tpu.pipeline_mode<synchronous>, transform_indices = @transform_2, window_bounds = array<i64: 8, 128>}, {pipeline_mode = #tpu.pipeline_mode<synchronous>, transform_indices = @transform_3, window_bounds = array<i64: 8, 8>}, {pipeline_mode = #tpu.pipeline_mode<synchronous>, transform_indices = @transform_4, window_bounds = array<i64: 8, 12>}, {transform_indices = @transform_5, window_bounds = array<i64: 2>}, {transform_indices = @transform_6, window_bounds = array<i64: 1, 8, 128>}]} {
    %c0 = arith.constant 0 : index
    %0 = memref.load %arg6[%c0] : memref<2xf32, #tpu.memory_space<smem>>
    %c1 = arith.constant 1 : index
    %1 = memref.load %arg6[%c1] : memref<2xf32, #tpu.memory_space<smem>>
    %c0_0 = arith.constant 0 : index
    %c0_1 = arith.constant 0 : index
    %c0_2 = arith.constant 0 : index
    %2 = vector.load %arg2[%c0_0, %c0_1, %c0_2] : memref<4x8x128xf32, #tpu.memory_space<vmem>>, vector<4x8x128xf32>
    %3 = vector.extract_strided_slice %2 {offsets = [0, 0, 0], sizes = [4, 8, 64], strides = [1, 1, 1]} : vector<4x8x128xf32> to vector<4x8x64xf32>
    %4 = vector.extract_strided_slice %2 {offsets = [0, 0, 64], sizes = [4, 8, 64], strides = [1, 1, 1]} : vector<4x8x128xf32> to vector<4x8x64xf32>
    %c0_3 = arith.constant 0 : index
    %c0_4 = arith.constant 0 : index
    %5 = vector.load %arg3[%c0_3, %c0_4] : memref<8x128xf32, #tpu.memory_space<vmem>>, vector<8x128xf32>
    %6 = vector.extract_strided_slice %5 {offsets = [0, 0], sizes = [8, 64], strides = [1, 1]} : vector<8x128xf32> to vector<8x64xf32>
    %7 = vector.extract_strided_slice %5 {offsets = [0, 64], sizes = [8, 64], strides = [1, 1]} : vector<8x128xf32> to vector<8x64xf32>
    %c0_5 = arith.constant 0 : index
    %c0_6 = arith.constant 0 : index
    %8 = vector.load %arg4[%c0_5, %c0_6] : memref<8x8xf32, #tpu.memory_space<vmem>>, vector<8x8xf32>
    %9 = vector.extract_strided_slice %8 {offsets = [0, 0], sizes = [8, 4], strides = [1, 1]} : vector<8x8xf32> to vector<8x4xf32>
    %10 = vector.extract_strided_slice %8 {offsets = [0, 4], sizes = [8, 4], strides = [1, 1]} : vector<8x8xf32> to vector<8x4xf32>
    %c0_7 = arith.constant 0 : index
    %c0_8 = arith.constant 0 : index
    %11 = vector.load %arg5[%c0_7, %c0_8] : memref<8x12xf32, #tpu.memory_space<vmem>>, vector<8x12xf32>
    %12 = vector.extract_strided_slice %11 {offsets = [0, 0], sizes = [8, 1], strides = [1, 1]} : vector<8x12xf32> to vector<8x1xf32>
    %13 = vector.extract_strided_slice %11 {offsets = [0, 1], sizes = [8, 1], strides = [1, 1]} : vector<8x12xf32> to vector<8x1xf32>
    %14 = vector.extract_strided_slice %11 {offsets = [0, 2], sizes = [8, 1], strides = [1, 1]} : vector<8x12xf32> to vector<8x1xf32>
    %15 = vector.extract_strided_slice %11 {offsets = [0, 3], sizes = [8, 1], strides = [1, 1]} : vector<8x12xf32> to vector<8x1xf32>
    %16 = vector.extract_strided_slice %11 {offsets = [0, 4], sizes = [8, 1], strides = [1, 1]} : vector<8x12xf32> to vector<8x1xf32>
    %17 = vector.extract_strided_slice %11 {offsets = [0, 5], sizes = [8, 1], strides = [1, 1]} : vector<8x12xf32> to vector<8x1xf32>
    %18 = vector.extract_strided_slice %11 {offsets = [0, 6], sizes = [8, 1], strides = [1, 1]} : vector<8x12xf32> to vector<8x1xf32>
    %19 = vector.extract_strided_slice %11 {offsets = [0, 7], sizes = [8, 1], strides = [1, 1]} : vector<8x12xf32> to vector<8x1xf32>
    %20 = vector.extract_strided_slice %11 {offsets = [0, 8], sizes = [8, 1], strides = [1, 1]} : vector<8x12xf32> to vector<8x1xf32>
    %21 = vector.extract_strided_slice %11 {offsets = [0, 9], sizes = [8, 1], strides = [1, 1]} : vector<8x12xf32> to vector<8x1xf32>
    %22 = vector.extract_strided_slice %11 {offsets = [0, 10], sizes = [8, 1], strides = [1, 1]} : vector<8x12xf32> to vector<8x1xf32>
    %23 = vector.extract_strided_slice %11 {offsets = [0, 11], sizes = [8, 1], strides = [1, 1]} : vector<8x12xf32> to vector<8x1xf32>
    %c0_9 = arith.constant 0 : index
    %c0_10 = arith.constant 0 : index
    %c0_11 = arith.constant 0 : index
    %24 = vector.load %arg1[%c0_9, %c0_10, %c0_11] : memref<1x4x128xf32, #tpu.memory_space<vmem>>, vector<1x4x128xf32>
    %25 = vector.shape_cast %24 : vector<1x4x128xf32> to vector<4x128xf32>
    %26 = vector.extract_strided_slice %25 {offsets = [0, 0], sizes = [4, 64], strides = [1, 1]} : vector<4x128xf32> to vector<4x64xf32>
    %27 = vector.extract_strided_slice %25 {offsets = [0, 64], sizes = [4, 64], strides = [1, 1]} : vector<4x128xf32> to vector<4x64xf32>
    %cst = arith.constant 0.000000e+00 : f32
    %28 = vector.broadcast %cst : f32 to vector<8x64xf32>
    %cst_12 = arith.constant 0.000000e+00 : f32
    %29 = vector.broadcast %cst_12 : f32 to vector<8x64xf32>
    %cst_13 = arith.constant 0.000000e+00 : f32
    %30 = vector.broadcast %cst_13 : f32 to vector<8x64xf32>
    %cst_14 = arith.constant 0.000000e+00 : f32
    %31 = vector.broadcast %cst_14 : f32 to vector<8x64xf32>
    %32 = vector.extract_strided_slice %26 {offsets = [0, 0], sizes = [1, 64], strides = [1, 1]} : vector<4x64xf32> to vector<1x64xf32>
    %33 = vector.extract_strided_slice %27 {offsets = [0, 0], sizes = [1, 64], strides = [1, 1]} : vector<4x64xf32> to vector<1x64xf32>
    %34 = vector.extract_strided_slice %3 {offsets = [0, 0, 0], sizes = [1, 8, 64], strides = [1, 1, 1]} : vector<4x8x64xf32> to vector<1x8x64xf32>
    %35 = vector.shape_cast %34 : vector<1x8x64xf32> to vector<8x64xf32>
    %36 = vector.extract_strided_slice %4 {offsets = [0, 0, 0], sizes = [1, 8, 64], strides = [1, 1, 1]} : vector<4x8x64xf32> to vector<1x8x64xf32>
    %37 = vector.shape_cast %36 : vector<1x8x64xf32> to vector<8x64xf32>
    %38 = vector.broadcast %32 : vector<1x64xf32> to vector<8x64xf32>
    %39 = arith.mulf %38, %35 : vector<8x64xf32>
    %40 = arith.addf %28, %39 : vector<8x64xf32>
    %41 = vector.broadcast %33 : vector<1x64xf32> to vector<8x64xf32>
    %42 = arith.mulf %41, %37 : vector<8x64xf32>
    %43 = arith.subf %40, %42 : vector<8x64xf32>
    %44 = vector.broadcast %32 : vector<1x64xf32> to vector<8x64xf32>
    %45 = arith.mulf %44, %37 : vector<8x64xf32>
    %46 = arith.addf %29, %45 : vector<8x64xf32>
    %47 = vector.broadcast %33 : vector<1x64xf32> to vector<8x64xf32>
    %48 = arith.mulf %47, %35 : vector<8x64xf32>
    %49 = arith.addf %46, %48 : vector<8x64xf32>
    %50 = vector.extract_strided_slice %9 {offsets = [0, 0], sizes = [8, 1], strides = [1, 1]} : vector<8x4xf32> to vector<8x1xf32>
    %51 = vector.extract_strided_slice %10 {offsets = [0, 0], sizes = [8, 1], strides = [1, 1]} : vector<8x4xf32> to vector<8x1xf32>
    %52 = vector.broadcast %50 : vector<8x1xf32> to vector<8x64xf32>
    %53 = vector.broadcast %32 : vector<1x64xf32> to vector<8x64xf32>
    %54 = arith.mulf %52, %53 : vector<8x64xf32>
    %55 = arith.addf %30, %54 : vector<8x64xf32>
    %56 = vector.broadcast %51 : vector<8x1xf32> to vector<8x64xf32>
    %57 = vector.broadcast %33 : vector<1x64xf32> to vector<8x64xf32>
    %58 = arith.mulf %56, %57 : vector<8x64xf32>
    %59 = arith.subf %55, %58 : vector<8x64xf32>
    %60 = vector.broadcast %50 : vector<8x1xf32> to vector<8x64xf32>
    %61 = vector.broadcast %33 : vector<1x64xf32> to vector<8x64xf32>
    %62 = arith.mulf %60, %61 : vector<8x64xf32>
    %63 = arith.addf %31, %62 : vector<8x64xf32>
    %64 = vector.broadcast %51 : vector<8x1xf32> to vector<8x64xf32>
    %65 = vector.broadcast %32 : vector<1x64xf32> to vector<8x64xf32>
    %66 = arith.mulf %64, %65 : vector<8x64xf32>
    %67 = arith.addf %63, %66 : vector<8x64xf32>
    %68 = vector.extract_strided_slice %26 {offsets = [1, 0], sizes = [1, 64], strides = [1, 1]} : vector<4x64xf32> to vector<1x64xf32>
    %69 = vector.extract_strided_slice %27 {offsets = [1, 0], sizes = [1, 64], strides = [1, 1]} : vector<4x64xf32> to vector<1x64xf32>
    %70 = vector.extract_strided_slice %3 {offsets = [1, 0, 0], sizes = [1, 8, 64], strides = [1, 1, 1]} : vector<4x8x64xf32> to vector<1x8x64xf32>
    %71 = vector.shape_cast %70 : vector<1x8x64xf32> to vector<8x64xf32>
    %72 = vector.extract_strided_slice %4 {offsets = [1, 0, 0], sizes = [1, 8, 64], strides = [1, 1, 1]} : vector<4x8x64xf32> to vector<1x8x64xf32>
    %73 = vector.shape_cast %72 : vector<1x8x64xf32> to vector<8x64xf32>
    %74 = vector.broadcast %68 : vector<1x64xf32> to vector<8x64xf32>
    %75 = arith.mulf %74, %71 : vector<8x64xf32>
    %76 = arith.addf %43, %75 : vector<8x64xf32>
    %77 = vector.broadcast %69 : vector<1x64xf32> to vector<8x64xf32>
    %78 = arith.mulf %77, %73 : vector<8x64xf32>
    %79 = arith.subf %76, %78 : vector<8x64xf32>
    %80 = vector.broadcast %68 : vector<1x64xf32> to vector<8x64xf32>
    %81 = arith.mulf %80, %73 : vector<8x64xf32>
    %82 = arith.addf %49, %81 : vector<8x64xf32>
    %83 = vector.broadcast %69 : vector<1x64xf32> to vector<8x64xf32>
    %84 = arith.mulf %83, %71 : vector<8x64xf32>
    %85 = arith.addf %82, %84 : vector<8x64xf32>
    %86 = vector.extract_strided_slice %9 {offsets = [0, 1], sizes = [8, 1], strides = [1, 1]} : vector<8x4xf32> to vector<8x1xf32>
    %87 = vector.extract_strided_slice %10 {offsets = [0, 1], sizes = [8, 1], strides = [1, 1]} : vector<8x4xf32> to vector<8x1xf32>
    %88 = vector.broadcast %86 : vector<8x1xf32> to vector<8x64xf32>
    %89 = vector.broadcast %68 : vector<1x64xf32> to vector<8x64xf32>
    %90 = arith.mulf %88, %89 : vector<8x64xf32>
    %91 = arith.addf %59, %90 : vector<8x64xf32>
    %92 = vector.broadcast %87 : vector<8x1xf32> to vector<8x64xf32>
    %93 = vector.broadcast %69 : vector<1x64xf32> to vector<8x64xf32>
    %94 = arith.mulf %92, %93 : vector<8x64xf32>
    %95 = arith.subf %91, %94 : vector<8x64xf32>
    %96 = vector.broadcast %86 : vector<8x1xf32> to vector<8x64xf32>
    %97 = vector.broadcast %69 : vector<1x64xf32> to vector<8x64xf32>
    %98 = arith.mulf %96, %97 : vector<8x64xf32>
    %99 = arith.addf %67, %98 : vector<8x64xf32>
    %100 = vector.broadcast %87 : vector<8x1xf32> to vector<8x64xf32>
    %101 = vector.broadcast %68 : vector<1x64xf32> to vector<8x64xf32>
    %102 = arith.mulf %100, %101 : vector<8x64xf32>
    %103 = arith.addf %99, %102 : vector<8x64xf32>
    %104 = vector.extract_strided_slice %26 {offsets = [2, 0], sizes = [1, 64], strides = [1, 1]} : vector<4x64xf32> to vector<1x64xf32>
    %105 = vector.extract_strided_slice %27 {offsets = [2, 0], sizes = [1, 64], strides = [1, 1]} : vector<4x64xf32> to vector<1x64xf32>
    %106 = vector.extract_strided_slice %3 {offsets = [2, 0, 0], sizes = [1, 8, 64], strides = [1, 1, 1]} : vector<4x8x64xf32> to vector<1x8x64xf32>
    %107 = vector.shape_cast %106 : vector<1x8x64xf32> to vector<8x64xf32>
    %108 = vector.extract_strided_slice %4 {offsets = [2, 0, 0], sizes = [1, 8, 64], strides = [1, 1, 1]} : vector<4x8x64xf32> to vector<1x8x64xf32>
    %109 = vector.shape_cast %108 : vector<1x8x64xf32> to vector<8x64xf32>
    %110 = vector.broadcast %104 : vector<1x64xf32> to vector<8x64xf32>
    %111 = arith.mulf %110, %107 : vector<8x64xf32>
    %112 = arith.addf %79, %111 : vector<8x64xf32>
    %113 = vector.broadcast %105 : vector<1x64xf32> to vector<8x64xf32>
    %114 = arith.mulf %113, %109 : vector<8x64xf32>
    %115 = arith.subf %112, %114 : vector<8x64xf32>
    %116 = vector.broadcast %104 : vector<1x64xf32> to vector<8x64xf32>
    %117 = arith.mulf %116, %109 : vector<8x64xf32>
    %118 = arith.addf %85, %117 : vector<8x64xf32>
    %119 = vector.broadcast %105 : vector<1x64xf32> to vector<8x64xf32>
    %120 = arith.mulf %119, %107 : vector<8x64xf32>
    %121 = arith.addf %118, %120 : vector<8x64xf32>
    %122 = vector.extract_strided_slice %9 {offsets = [0, 2], sizes = [8, 1], strides = [1, 1]} : vector<8x4xf32> to vector<8x1xf32>
    %123 = vector.extract_strided_slice %10 {offsets = [0, 2], sizes = [8, 1], strides = [1, 1]} : vector<8x4xf32> to vector<8x1xf32>
    %124 = vector.broadcast %122 : vector<8x1xf32> to vector<8x64xf32>
    %125 = vector.broadcast %104 : vector<1x64xf32> to vector<8x64xf32>
    %126 = arith.mulf %124, %125 : vector<8x64xf32>
    %127 = arith.addf %95, %126 : vector<8x64xf32>
    %128 = vector.broadcast %123 : vector<8x1xf32> to vector<8x64xf32>
    %129 = vector.broadcast %105 : vector<1x64xf32> to vector<8x64xf32>
    %130 = arith.mulf %128, %129 : vector<8x64xf32>
    %131 = arith.subf %127, %130 : vector<8x64xf32>
    %132 = vector.broadcast %122 : vector<8x1xf32> to vector<8x64xf32>
    %133 = vector.broadcast %105 : vector<1x64xf32> to vector<8x64xf32>
    %134 = arith.mulf %132, %133 : vector<8x64xf32>
    %135 = arith.addf %103, %134 : vector<8x64xf32>
    %136 = vector.broadcast %123 : vector<8x1xf32> to vector<8x64xf32>
    %137 = vector.broadcast %104 : vector<1x64xf32> to vector<8x64xf32>
    %138 = arith.mulf %136, %137 : vector<8x64xf32>
    %139 = arith.addf %135, %138 : vector<8x64xf32>
    %140 = vector.extract_strided_slice %26 {offsets = [3, 0], sizes = [1, 64], strides = [1, 1]} : vector<4x64xf32> to vector<1x64xf32>
    %141 = vector.extract_strided_slice %27 {offsets = [3, 0], sizes = [1, 64], strides = [1, 1]} : vector<4x64xf32> to vector<1x64xf32>
    %142 = vector.extract_strided_slice %3 {offsets = [3, 0, 0], sizes = [1, 8, 64], strides = [1, 1, 1]} : vector<4x8x64xf32> to vector<1x8x64xf32>
    %143 = vector.shape_cast %142 : vector<1x8x64xf32> to vector<8x64xf32>
    %144 = vector.extract_strided_slice %4 {offsets = [3, 0, 0], sizes = [1, 8, 64], strides = [1, 1, 1]} : vector<4x8x64xf32> to vector<1x8x64xf32>
    %145 = vector.shape_cast %144 : vector<1x8x64xf32> to vector<8x64xf32>
    %146 = vector.broadcast %140 : vector<1x64xf32> to vector<8x64xf32>
    %147 = arith.mulf %146, %143 : vector<8x64xf32>
    %148 = arith.addf %115, %147 : vector<8x64xf32>
    %149 = vector.broadcast %141 : vector<1x64xf32> to vector<8x64xf32>
    %150 = arith.mulf %149, %145 : vector<8x64xf32>
    %151 = arith.subf %148, %150 : vector<8x64xf32>
    %152 = vector.broadcast %140 : vector<1x64xf32> to vector<8x64xf32>
    %153 = arith.mulf %152, %145 : vector<8x64xf32>
    %154 = arith.addf %121, %153 : vector<8x64xf32>
    %155 = vector.broadcast %141 : vector<1x64xf32> to vector<8x64xf32>
    %156 = arith.mulf %155, %143 : vector<8x64xf32>
    %157 = arith.addf %154, %156 : vector<8x64xf32>
    %158 = vector.extract_strided_slice %9 {offsets = [0, 3], sizes = [8, 1], strides = [1, 1]} : vector<8x4xf32> to vector<8x1xf32>
    %159 = vector.extract_strided_slice %10 {offsets = [0, 3], sizes = [8, 1], strides = [1, 1]} : vector<8x4xf32> to vector<8x1xf32>
    %160 = vector.broadcast %158 : vector<8x1xf32> to vector<8x64xf32>
    %161 = vector.broadcast %140 : vector<1x64xf32> to vector<8x64xf32>
    %162 = arith.mulf %160, %161 : vector<8x64xf32>
    %163 = arith.addf %131, %162 : vector<8x64xf32>
    %164 = vector.broadcast %159 : vector<8x1xf32> to vector<8x64xf32>
    %165 = vector.broadcast %141 : vector<1x64xf32> to vector<8x64xf32>
    %166 = arith.mulf %164, %165 : vector<8x64xf32>
    %167 = arith.subf %163, %166 : vector<8x64xf32>
    %168 = vector.broadcast %158 : vector<8x1xf32> to vector<8x64xf32>
    %169 = vector.broadcast %141 : vector<1x64xf32> to vector<8x64xf32>
    %170 = arith.mulf %168, %169 : vector<8x64xf32>
    %171 = arith.addf %139, %170 : vector<8x64xf32>
    %172 = vector.broadcast %159 : vector<8x1xf32> to vector<8x64xf32>
    %173 = vector.broadcast %140 : vector<1x64xf32> to vector<8x64xf32>
    %174 = arith.mulf %172, %173 : vector<8x64xf32>
    %175 = arith.addf %171, %174 : vector<8x64xf32>
    %cst_15 = arith.constant dense<0.000000e+00> : vector<8xf32>
    %176 = vector.multi_reduction <add>, %151, %cst_15 [1] : vector<8x64xf32> to vector<8xf32>
    %177 = vector.shape_cast %176 : vector<8xf32> to vector<8x1xf32>
    %cst_16 = arith.constant 6.400000e+01 : f32
    %178 = vector.broadcast %cst_16 : f32 to vector<8x1xf32>
    %179 = arith.divf %177, %178 : vector<8x1xf32>
    %cst_17 = arith.constant dense<0.000000e+00> : vector<8xf32>
    %180 = vector.multi_reduction <add>, %157, %cst_17 [1] : vector<8x64xf32> to vector<8xf32>
    %181 = vector.shape_cast %180 : vector<8xf32> to vector<8x1xf32>
    %cst_18 = arith.constant 6.400000e+01 : f32
    %182 = vector.broadcast %cst_18 : f32 to vector<8x1xf32>
    %183 = arith.divf %181, %182 : vector<8x1xf32>
    %184 = vector.broadcast %179 : vector<8x1xf32> to vector<8x64xf32>
    %185 = arith.subf %151, %184 : vector<8x64xf32>
    %186 = vector.broadcast %183 : vector<8x1xf32> to vector<8x64xf32>
    %187 = arith.subf %157, %186 : vector<8x64xf32>
    %188 = arith.mulf %185, %185 : vector<8x64xf32>
    %189 = arith.mulf %187, %187 : vector<8x64xf32>
    %190 = arith.addf %188, %189 : vector<8x64xf32>
    %cst_19 = arith.constant dense<0.000000e+00> : vector<8xf32>
    %191 = vector.multi_reduction <add>, %190, %cst_19 [1] : vector<8x64xf32> to vector<8xf32>
    %192 = vector.shape_cast %191 : vector<8xf32> to vector<8x1xf32>
    %cst_20 = arith.constant 6.400000e+01 : f32
    %193 = vector.broadcast %cst_20 : f32 to vector<8x1xf32>
    %194 = arith.divf %192, %193 : vector<8x1xf32>
    %cst_21 = arith.constant 9.99999974E-6 : f32
    %195 = vector.broadcast %cst_21 : f32 to vector<8x1xf32>
    %196 = arith.addf %194, %195 : vector<8x1xf32>
    %197 = math.rsqrt %196 : vector<8x1xf32>
    %198 = vector.broadcast %197 : vector<8x1xf32> to vector<8x64xf32>
    %199 = arith.mulf %185, %198 : vector<8x64xf32>
    %200 = vector.broadcast %197 : vector<8x1xf32> to vector<8x64xf32>
    %201 = arith.mulf %187, %200 : vector<8x64xf32>
    %202 = vector.broadcast %12 : vector<8x1xf32> to vector<8x64xf32>
    %203 = arith.mulf %202, %199 : vector<8x64xf32>
    %204 = vector.broadcast %18 : vector<8x1xf32> to vector<8x64xf32>
    %205 = arith.mulf %204, %201 : vector<8x64xf32>
    %206 = arith.subf %203, %205 : vector<8x64xf32>
    %207 = vector.broadcast %13 : vector<8x1xf32> to vector<8x64xf32>
    %208 = arith.addf %206, %207 : vector<8x64xf32>
    %209 = vector.broadcast %12 : vector<8x1xf32> to vector<8x64xf32>
    %210 = arith.mulf %209, %201 : vector<8x64xf32>
    %211 = vector.broadcast %18 : vector<8x1xf32> to vector<8x64xf32>
    %212 = arith.mulf %211, %199 : vector<8x64xf32>
    %213 = arith.addf %210, %212 : vector<8x64xf32>
    %214 = vector.broadcast %19 : vector<8x1xf32> to vector<8x64xf32>
    %215 = arith.addf %213, %214 : vector<8x64xf32>
    %216 = arith.mulf %208, %208 : vector<8x64xf32>
    %217 = arith.mulf %215, %215 : vector<8x64xf32>
    %218 = arith.addf %216, %217 : vector<8x64xf32>
    %cst_22 = arith.constant 1.000000e-30 : f32
    %219 = vector.broadcast %cst_22 : f32 to vector<8x64xf32>
    %220 = arith.addf %218, %219 : vector<8x64xf32>
    %221 = math.rsqrt %220 : vector<8x64xf32>
    %222 = arith.mulf %218, %221 : vector<8x64xf32>
    %223 = arith.mulf %215, %221 : vector<8x64xf32>
    %cst_23 = arith.constant 0.000000e+00 : f32
    %224 = vector.broadcast %cst_23 : f32 to vector<8x64xf32>
    %225 = arith.subf %224, %222 : vector<8x64xf32>
    %226 = math.exp %225 : vector<8x64xf32>
    %cst_24 = arith.constant 1.000000e+00 : f32
    %227 = vector.broadcast %cst_24 : f32 to vector<8x64xf32>
    %228 = arith.addf %227, %226 : vector<8x64xf32>
    %229 = math.log %228 : vector<8x64xf32>
    %230 = arith.addf %222, %229 : vector<8x64xf32>
    %231 = vector.broadcast %0 : f32 to vector<8x64xf32>
    %232 = arith.mulf %231, %230 : vector<8x64xf32>
    %233 = vector.broadcast %1 : f32 to vector<8x64xf32>
    %234 = arith.mulf %233, %223 : vector<8x64xf32>
    %235 = math.cos %234 : vector<8x64xf32>
    %236 = arith.mulf %232, %235 : vector<8x64xf32>
    %237 = math.sin %234 : vector<8x64xf32>
    %238 = arith.mulf %232, %237 : vector<8x64xf32>
    %239 = arith.mulf %236, %6 : vector<8x64xf32>
    %240 = arith.mulf %238, %7 : vector<8x64xf32>
    %241 = arith.subf %239, %240 : vector<8x64xf32>
    %242 = arith.mulf %236, %7 : vector<8x64xf32>
    %243 = arith.mulf %238, %6 : vector<8x64xf32>
    %244 = arith.addf %242, %243 : vector<8x64xf32>
    %cst_25 = arith.constant dense<0.000000e+00> : vector<8xf32>
    %245 = vector.multi_reduction <add>, %241, %cst_25 [1] : vector<8x64xf32> to vector<8xf32>
    %246 = vector.shape_cast %245 : vector<8xf32> to vector<8x1xf32>
    %cst_26 = arith.constant 6.400000e+01 : f32
    %247 = vector.broadcast %cst_26 : f32 to vector<8x1xf32>
    %248 = arith.divf %246, %247 : vector<8x1xf32>
    %cst_27 = arith.constant dense<0.000000e+00> : vector<8xf32>
    %249 = vector.multi_reduction <add>, %244, %cst_27 [1] : vector<8x64xf32> to vector<8xf32>
    %250 = vector.shape_cast %249 : vector<8xf32> to vector<8x1xf32>
    %cst_28 = arith.constant 6.400000e+01 : f32
    %251 = vector.broadcast %cst_28 : f32 to vector<8x1xf32>
    %252 = arith.divf %250, %251 : vector<8x1xf32>
    %253 = vector.broadcast %248 : vector<8x1xf32> to vector<8x64xf32>
    %254 = arith.subf %241, %253 : vector<8x64xf32>
    %255 = vector.broadcast %252 : vector<8x1xf32> to vector<8x64xf32>
    %256 = arith.subf %244, %255 : vector<8x64xf32>
    %257 = arith.mulf %254, %254 : vector<8x64xf32>
    %258 = arith.mulf %256, %256 : vector<8x64xf32>
    %259 = arith.addf %257, %258 : vector<8x64xf32>
    %cst_29 = arith.constant dense<0.000000e+00> : vector<8xf32>
    %260 = vector.multi_reduction <add>, %259, %cst_29 [1] : vector<8x64xf32> to vector<8xf32>
    %261 = vector.shape_cast %260 : vector<8xf32> to vector<8x1xf32>
    %cst_30 = arith.constant 6.400000e+01 : f32
    %262 = vector.broadcast %cst_30 : f32 to vector<8x1xf32>
    %263 = arith.divf %261, %262 : vector<8x1xf32>
    %cst_31 = arith.constant 9.99999974E-6 : f32
    %264 = vector.broadcast %cst_31 : f32 to vector<8x1xf32>
    %265 = arith.addf %263, %264 : vector<8x1xf32>
    %266 = math.rsqrt %265 : vector<8x1xf32>
    %267 = vector.broadcast %266 : vector<8x1xf32> to vector<8x64xf32>
    %268 = arith.mulf %254, %267 : vector<8x64xf32>
    %269 = vector.broadcast %266 : vector<8x1xf32> to vector<8x64xf32>
    %270 = arith.mulf %256, %269 : vector<8x64xf32>
    %271 = vector.broadcast %14 : vector<8x1xf32> to vector<8x64xf32>
    %272 = arith.mulf %271, %268 : vector<8x64xf32>
    %273 = vector.broadcast %20 : vector<8x1xf32> to vector<8x64xf32>
    %274 = arith.mulf %273, %270 : vector<8x64xf32>
    %275 = arith.subf %272, %274 : vector<8x64xf32>
    %276 = vector.broadcast %15 : vector<8x1xf32> to vector<8x64xf32>
    %277 = arith.addf %275, %276 : vector<8x64xf32>
    %278 = vector.broadcast %14 : vector<8x1xf32> to vector<8x64xf32>
    %279 = arith.mulf %278, %270 : vector<8x64xf32>
    %280 = vector.broadcast %20 : vector<8x1xf32> to vector<8x64xf32>
    %281 = arith.mulf %280, %268 : vector<8x64xf32>
    %282 = arith.addf %279, %281 : vector<8x64xf32>
    %283 = vector.broadcast %21 : vector<8x1xf32> to vector<8x64xf32>
    %284 = arith.addf %282, %283 : vector<8x64xf32>
    %cst_32 = arith.constant dense<0.000000e+00> : vector<8xf32>
    %285 = vector.multi_reduction <add>, %167, %cst_32 [1] : vector<8x64xf32> to vector<8xf32>
    %286 = vector.shape_cast %285 : vector<8xf32> to vector<8x1xf32>
    %cst_33 = arith.constant 6.400000e+01 : f32
    %287 = vector.broadcast %cst_33 : f32 to vector<8x1xf32>
    %288 = arith.divf %286, %287 : vector<8x1xf32>
    %cst_34 = arith.constant dense<0.000000e+00> : vector<8xf32>
    %289 = vector.multi_reduction <add>, %175, %cst_34 [1] : vector<8x64xf32> to vector<8xf32>
    %290 = vector.shape_cast %289 : vector<8xf32> to vector<8x1xf32>
    %cst_35 = arith.constant 6.400000e+01 : f32
    %291 = vector.broadcast %cst_35 : f32 to vector<8x1xf32>
    %292 = arith.divf %290, %291 : vector<8x1xf32>
    %293 = vector.broadcast %288 : vector<8x1xf32> to vector<8x64xf32>
    %294 = arith.subf %167, %293 : vector<8x64xf32>
    %295 = vector.broadcast %292 : vector<8x1xf32> to vector<8x64xf32>
    %296 = arith.subf %175, %295 : vector<8x64xf32>
    %297 = arith.mulf %294, %294 : vector<8x64xf32>
    %298 = arith.mulf %296, %296 : vector<8x64xf32>
    %299 = arith.addf %297, %298 : vector<8x64xf32>
    %cst_36 = arith.constant dense<0.000000e+00> : vector<8xf32>
    %300 = vector.multi_reduction <add>, %299, %cst_36 [1] : vector<8x64xf32> to vector<8xf32>
    %301 = vector.shape_cast %300 : vector<8xf32> to vector<8x1xf32>
    %cst_37 = arith.constant 6.400000e+01 : f32
    %302 = vector.broadcast %cst_37 : f32 to vector<8x1xf32>
    %303 = arith.divf %301, %302 : vector<8x1xf32>
    %cst_38 = arith.constant 9.99999974E-6 : f32
    %304 = vector.broadcast %cst_38 : f32 to vector<8x1xf32>
    %305 = arith.addf %303, %304 : vector<8x1xf32>
    %306 = math.rsqrt %305 : vector<8x1xf32>
    %307 = vector.broadcast %306 : vector<8x1xf32> to vector<8x64xf32>
    %308 = arith.mulf %294, %307 : vector<8x64xf32>
    %309 = vector.broadcast %306 : vector<8x1xf32> to vector<8x64xf32>
    %310 = arith.mulf %296, %309 : vector<8x64xf32>
    %311 = vector.broadcast %16 : vector<8x1xf32> to vector<8x64xf32>
    %312 = arith.mulf %311, %308 : vector<8x64xf32>
    %313 = vector.broadcast %22 : vector<8x1xf32> to vector<8x64xf32>
    %314 = arith.mulf %313, %310 : vector<8x64xf32>
    %315 = arith.subf %312, %314 : vector<8x64xf32>
    %316 = vector.broadcast %17 : vector<8x1xf32> to vector<8x64xf32>
    %317 = arith.addf %315, %316 : vector<8x64xf32>
    %318 = vector.broadcast %16 : vector<8x1xf32> to vector<8x64xf32>
    %319 = arith.mulf %318, %310 : vector<8x64xf32>
    %320 = vector.broadcast %22 : vector<8x1xf32> to vector<8x64xf32>
    %321 = arith.mulf %320, %308 : vector<8x64xf32>
    %322 = arith.addf %319, %321 : vector<8x64xf32>
    %323 = vector.broadcast %23 : vector<8x1xf32> to vector<8x64xf32>
    %324 = arith.addf %322, %323 : vector<8x64xf32>
    %325 = arith.addf %277, %317 : vector<8x64xf32>
    %326 = arith.addf %284, %324 : vector<8x64xf32>
    %327 = arith.mulf %325, %325 : vector<8x64xf32>
    %328 = arith.mulf %326, %326 : vector<8x64xf32>
    %329 = arith.addf %327, %328 : vector<8x64xf32>
    %cst_39 = arith.constant 1.000000e-30 : f32
    %330 = vector.broadcast %cst_39 : f32 to vector<8x64xf32>
    %331 = arith.addf %329, %330 : vector<8x64xf32>
    %332 = math.rsqrt %331 : vector<8x64xf32>
    %333 = arith.mulf %329, %332 : vector<8x64xf32>
    %334 = arith.mulf %326, %332 : vector<8x64xf32>
    %cst_40 = arith.constant 0.000000e+00 : f32
    %335 = vector.broadcast %cst_40 : f32 to vector<8x64xf32>
    %336 = arith.subf %335, %333 : vector<8x64xf32>
    %337 = math.exp %336 : vector<8x64xf32>
    %cst_41 = arith.constant 1.000000e+00 : f32
    %338 = vector.broadcast %cst_41 : f32 to vector<8x64xf32>
    %339 = arith.addf %338, %337 : vector<8x64xf32>
    %340 = math.log %339 : vector<8x64xf32>
    %341 = arith.addf %333, %340 : vector<8x64xf32>
    %342 = vector.broadcast %0 : f32 to vector<8x64xf32>
    %343 = arith.mulf %342, %341 : vector<8x64xf32>
    %344 = vector.broadcast %1 : f32 to vector<8x64xf32>
    %345 = arith.mulf %344, %334 : vector<8x64xf32>
    %346 = math.cos %345 : vector<8x64xf32>
    %347 = arith.mulf %343, %346 : vector<8x64xf32>
    %348 = math.sin %345 : vector<8x64xf32>
    %349 = arith.mulf %343, %348 : vector<8x64xf32>
    %350 = tpu.concatenate %347, %349 in 1 : vector<8x64xf32>, vector<8x64xf32> -> vector<8x128xf32>
    %c0_42 = arith.constant 0 : index
    %c0_43 = arith.constant 0 : index
    %c0_44 = arith.constant 0 : index
    %351 = vector.load %arg7[%c0_42, %c0_43, %c0_44] : memref<1x8x128xf32, #tpu.memory_space<vmem>>, vector<1x8x128xf32>
    %352 = vector.shape_cast %351 : vector<1x8x128xf32> to vector<8x128xf32>
    %353 = vector.shape_cast %350 : vector<8x128xf32> to vector<1x8x128xf32>
    tpu.vector_store %arg7[%c0_42, %c0_43, %c0_44], %353 {strides = array<i32>} : memref<1x8x128xf32, #tpu.memory_space<vmem>>, vector<1x8x128xf32>,
    return
  }
  func.func @transform_0(%arg0: i32) -> (i32, i32, i32) {
    %c0_i32 = arith.constant 0 : i32
    %c0_i32_0 = arith.constant 0 : i32
    %c0_i32_1 = arith.constant 0 : i32
    return %arg0, %c0_i32, %c0_i32_0 : i32, i32, i32
  }
  func.func @transform_1(%arg0: i32) -> (i32, i32, i32) {
    %c0_i32 = arith.constant 0 : i32
    %c0_i32_0 = arith.constant 0 : i32
    %c0_i32_1 = arith.constant 0 : i32
    %c0_i32_2 = arith.constant 0 : i32
    return %c0_i32, %c0_i32_0, %c0_i32_1 : i32, i32, i32
  }
  func.func @transform_2(%arg0: i32) -> (i32, i32) {
    %c0_i32 = arith.constant 0 : i32
    %c0_i32_0 = arith.constant 0 : i32
    %c0_i32_1 = arith.constant 0 : i32
    return %c0_i32, %c0_i32_0 : i32, i32
  }
  func.func @transform_3(%arg0: i32) -> (i32, i32) {
    %c0_i32 = arith.constant 0 : i32
    %c0_i32_0 = arith.constant 0 : i32
    %c0_i32_1 = arith.constant 0 : i32
    return %c0_i32, %c0_i32_0 : i32, i32
  }
  func.func @transform_4(%arg0: i32) -> (i32, i32) {
    %c0_i32 = arith.constant 0 : i32
    %c0_i32_0 = arith.constant 0 : i32
    %c0_i32_1 = arith.constant 0 : i32
    return %c0_i32, %c0_i32_0 : i32, i32
  }
  func.func @transform_5(%arg0: i32) -> i32 {
    %c0_i32 = arith.constant 0 : i32
    %c0_i32_0 = arith.constant 0 : i32
    return %c0_i32 : i32
  }
  func.func @transform_6(%arg0: i32) -> (i32, i32, i32) {
    %c0_i32 = arith.constant 0 : i32
    %c0_i32_0 = arith.constant 0 : i32
    %c0_i32_1 = arith.constant 0 : i32
    return %arg0, %c0_i32, %c0_i32_0 : i32, i32, i32
  }
}

</mosaic_0001>

<bundles_post_ra>
// kernel: tpu_custom_call.1
= control target key start
LH: loop header
LB: loop body
LE: loop exit
PB: predicated region body
PF: predicated region fallthrough
CT: control target
= control target key end

     0   :  { %11 = vsyncpa [#allocation3], 0  ;;  %s2466_s0 = inlined_call_operand.hbm [shape: f32[2,4,128], index: 0, kind: input, shape index: {}]   ;;  %s2467_s1 = inlined_call_operand.hbm [shape: f32[4,8,128], index: 1, kind: input, shape index: {}]   ;;  %s2468_s2 = inlined_call_operand.hbm [shape: f32[8,128], index: 2, kind: input, shape index: {}]   ;;  %s2469_s3 = inlined_call_operand.hbm [shape: f32[8,8], index: 3, kind: input, shape index: {}]   ;;  %s2470_s4 = inlined_call_operand.hbm [shape: f32[8,12], index: 4, kind: input, shape index: {}]   ;;  %s2471_s5 = inlined_call_operand.vmem [shape: f32[2], index: 5, kind: input, shape index: {}]   ;;  %s2472_s6 = inlined_call_operand.hbm [shape: f32[2,8,128], index: 6, kind: output, shape index: {}]  }
   0x1   :  { %13 = vsyncpa [#allocation3 + $0x1], 0 }
   0x2   :  { %14 = vsyncpa [#allocation7], 0 }
   0x3   :  { %15 = vsyncpa [#allocation10], 0 }
   0x4   :  { %16 = vsyncpa [#allocation5], 0 }
   0x5   :  { %17 = vsyncpa [#allocation4], 0 }
   0x6   :  { %19 = vsyncpa [#allocation4 + $0x1], 0  ;;  %s2022_s21 = smov 0   ;;  %s2024_s22 = smov 0  }
   0x7   :  { %s2026_s23 = smov 0   ;;  %s2028_s24 = smov 0  }
   0x8 LB: > { %s198_s27 = sshll.u32 %s2467_s1, 4  ;;  %s2046_s28 = sadd.s32 4294967295, %s1958_s24   ;;  %s1958_s24 = sphi %s2028_s24, %s2483_s24   ;;  %s1954_s23 = sphi %s2026_s23, %s2482_s23   ;;  %s1950_s22 = sphi %s2024_s22, %s2481_s22   ;;  %s1946_s21 = sphi %s2022_s21, %s2480_s21   ;;  %s199_s27 = int_to_ptr.hbm [resolvable:$true] %s198_s27 }
   0x9   : > { %p1521_p0 = scmp.ge.s32.totalorder %s1958_s24, 1  ;;  %p46_p1 = scmp.eq.s32.totalorder %s2046_s28, 0 }
   0xa   : > { %p187_p2 = scmp.lt.s32.totalorder %s1958_s24, 3  ;;  %s1960_s30 = smov [#allocation6]  }
   0xb   : > { %s200_s7 = sshll.u32 %s1960_s30, 4  ;;  %s225_s10 = sshll.u32 %s2469_s3, 4  ;;  %s201_s7 = int_to_ptr.vmem [resolvable:$true] %s200_s7  ;;  %s226_s10 = int_to_ptr.hbm [resolvable:$true] %s225_s10 }
   0xc   : > { %p2051_p3 = pnand %p1521_p0, %p187_p2  ;;  %s213_s14 = sshll.u32 %s2468_s2, 4  ;;  %s214_s14 = int_to_ptr.hbm [resolvable:$true] %s213_s14 }
   0xd   : > { %s1961_s15 = smov [#allocation9]   ;;  %s1962_s17 = smov 128  }
   0xe   : > { %p1579_p4 = pneg %p2051_p3  ;;  %s227_s16 = sshll.u32 %s1961_s15, 4  ;;  %s228_s16 = int_to_ptr.vmem [resolvable:$true] %s227_s16 }
   0xf   : > { %s1963_s18 = smov 8   ;;  %s237_s25 = sshll.u32 %s2470_s4, 4  ;;  %s238_s25 = int_to_ptr.hbm [resolvable:$true] %s237_s25 }
  0x10   : > { %p2063_p6 = pnand %p1579_p4, %p46_p1  ;;  %s1964_s26 = smov [#allocation8]  }
  0x11   : > { %s215_s30 = sshll.u32 %s1964_s26, 4  ;;  %s1966_s12 = smov [#allocation12]   ;;  %s216_s30 = int_to_ptr.vmem [resolvable:$true] %s215_s30 }
  0x12   : > { %1582 = dma.hbm_to_vmem [thread:$0]  (!%p2063_p6), %s199_s27, 512, %s201_s7, [#allocation7], %s1962_s17, %s1962_s17, %s1963_s18  }
  0x13   : > { %1588 = dma.hbm_to_vmem [thread:$0]  (!%p2063_p6), %s226_s10, 128, %s228_s16, [#allocation10]  }
  0x14   : > { %1585 = dma.hbm_to_vmem [thread:$0]  (!%p2063_p6), %s214_s14, 128, %s216_s30, [#allocation7]  }
  0x15   : > { %s1965_s27 = smov [#allocation11]   ;;  %s249_s10 = sshll.u32 %s2471_s5, 4  ;;  %s250_s10 = int_to_ptr.vmem [resolvable:$true] %s249_s10 }
  0x16   : > { %s239_s7 = sshll.u32 %s1965_s27, 4  ;;  %s1520_s13 = sadd.s32 4294967294, %s1958_s24   ;;  %s240_s7 = int_to_ptr.vmem [resolvable:$true] %s239_s7 }
  0x17   : > { %1591 = dma.hbm_to_vmem [thread:$0]  (!%p2063_p6), %s238_s25, 128, %s240_s7, [#allocation10]  }
  0x18   : > { %1594 = dma.vmem_to_smem (!%p2063_p6), %s250_s10, 16, %s1966_s12, [#allocation5]  }
  0x19   : > { %s2088_s14 = sadd.s32 1, %s1958_s24   ;;  %s32_s15 = sadd.s32 1, %s1954_s23 }
  0x1a   : > { %s29_s16 = ssub.s32 %s1958_s24, %s2088_s14  ;;  %p39_p7 = scmp.ne.s32.totalorder %s1954_s23, %s1950_s22 }
  0x1b   : > { %p30_p8 = scmp.eq.s32.totalorder %s29_s16, 0  ;;  %p40_p9 = scmp.eq.s32.totalorder %s1958_s24, 0 }
  0x1c   : > { %p45_p10 = scmp.ne.s32.totalorder %s1950_s22, %s1946_s21  ;;  %p174_p11 = scmp.eq.s32.totalorder %s2046_s28, 1 }
  0x1d   : > { %s2100_s17 = scalar_select %p30_p8, %s1954_s23, %s32_s15  }
  0x1e   : > { %p2104_p12 = por %p46_p1, %p45_p10  ;;  %p2108_p13 = por %p174_p11, %p39_p7 }
  0x1f   : > { %p180_p0 = scmp.eq.s32.totalorder %s1520_s13, 1  ;;  %p41_p2 = por %p40_p9, %p39_p7 }
  0x20   : > { %s260_s19 = sand.u32 1, %s1954_s23   ;;  %p1608_p6 = scmp.lt.s32.totalorder %s1958_s24, 2 }
  0x21   : > { %p2113_p4 = por %p180_p0, %p45_p10  ;;  %s1528_s25 = sshll.u32 %s260_s19, 2 }
  0x22   : > { %s1529_s26 = sshll.u32 %s1958_s24, 2  ;;  %s264_s9 = scalar_lea.vmem [#allocation2], %s1528_s25 }
  0x23   : > { %s268_s7 = scalar_lea.hbm %s2466_s0, %s1529_s26  ;;  %s272_s10 = sshll.u32 %s264_s9, 4  ;;  %s273_s10 = int_to_ptr.vmem [resolvable:$true] %s272_s10 }
  0x24   : > { %s270_s8 = sshll.u32 %s268_s7, 4  ;;  %p2122_p8 = pnand %p1608_p6, %p41_p2  ;;  %s271_s8 = int_to_ptr.hbm [resolvable:$true] %s270_s8 }
  0x25   : > { %s261_s13 = scalar_lea.sflag [#allocation3], %s260_s19  ;;  %s1850_s15 = sshra.s32 %s271_s8, 4  ;;  %s1851_s15 = int_to_ptr.hbm [resolvable:$true] %s1850_s15 }
  0x26   : > { %s1852_s16 = scalar_lea.hbm %s1851_s15, 4  ;;  %p1854_p9 = pneg %p2122_p8 }
  0x27   : > { %p1853_p7 = scmp.ne.s32.totalorder %s1851_s15, %s1852_s16  ;;  %s1857_s25 = scalar_lea.hbm %s2466_s0, 8 }
  0x28   : > { %p1858_p0 = scmp.lt.s32.totalorder %s1851_s15, %s2466_s0  ;;  %p1859_p2 = scmp.lt.s32.totalorder %s1857_s25, %s1852_s16 }
  0x29   : > { %p1855_p10 = pnand %p1854_p9, %p1853_p7 }
  0x2a   : > { %p1860_p6 = por %p1859_p2, %p1858_p0 }
  0x2b   : > { %p1856_p11 = pneg %p1855_p10 }
  0x2d   : > { %p1861_p5 = pnand %p1860_p6, %p1856_p11 }
  0x2f   : > { %1864 = shalt.err (!%p1861_p5)
}
  0x30   : > { %1598 = dma.hbm_to_vmem [thread:$0]  (!%p2122_p8), %s271_s8, 64, %s273_s10, %s261_s13  }
  0x31   : > { %281 = sbr.rel (%p2051_p3) target bundleno = 1421 (0x58d), region = 44  ;;  %s2139_s19 = sand.u32 (!%p2051_p3), 1, %s1950_s22  }
  0x32   : > { %s1531_s9 = sshll.u32 (!%p2051_p3), %s2139_s19, 2  ;;  %s284_s26 = scalar_lea.sflag (!%p2051_p3), [#allocation3], %s2139_s19 }
  0x33   : > { %s287_s30 = scalar_lea.vmem (!%p2051_p3), [#allocation2], %s1531_s9 }
  0x36   : > { %1925 = dma.done.wait (%p2104_p12), %s284_s26, 64  }
  0x37   : > { %1927 = vsyncadd (%p2104_p12), %s284_s26, 4294967232 }
  0x38   : > { %1929 = dma.done.wait (%p46_p1), [#allocation7], 640  }
  0x39   : > { %1931 = vsyncadd (%p46_p1), [#allocation7], 4294966656 }
  0x3a   : > { %1933 = dma.done.wait (%p46_p1), [#allocation10], 256  }
  0x3b   : > { %1935 = vsyncadd (%p46_p1), [#allocation10], 4294967040 }
  0x3c   : > { %1937 = dma.done.wait (%p46_p1), [#allocation5], 16  }
  0x3d   : > { %1939 = vsyncadd (%p46_p1), [#allocation5], 4294967280 }
  0x3e   : > { %318 = sfence }
  0x3f   : > { %v347_v0 = vld [vmem:[#allocation6 + $0x10] sm:$0xff]  ;;  %v352_v1 = vld [vmem:[%s287_s30] sm:$0xf]  ;;  %v345_v2 = vld [vmem:[#allocation6] sm:$0xff]  ;;  %s1967_s29 = smov 64   ;;  %v1968_v9 = vmov 4  }
  0x40   : > { %436 = vrot.lane.b32.xlu1 %v347_v0, %s1967_s29  ;;  %362 = vrot.lane.b32.xlu0 %v345_v2, %s1967_s29  ;;  %v2161_v3 = vperm.slane %v352_v1, 0  ;;  %v346_v5 = vld [vmem:[#allocation6 + $0x8] sm:$0xff]  ;;  %v348_v6 = vld [vmem:[#allocation6 + $0x18] sm:$0xff]  ;;  %v2165_v7 = vperm.slane %v352_v1, 1  ;;  %v2172_v10 = vperm.slane %v352_v1, 2  ;;  %v1969_v11 = vmov 7  }
  0x41   : > { %1674 = vset.pattern.permute.xlu0 %v1968_v9  ;;  %1677 = vset.pattern.permute.xlu2 %v1969_v11  ;;  %v2180_v18 = vld [vmem:[#allocation9] sm:$0xff]  ;;  %v2183_v20 = vperm.slane %v352_v1, 3  ;;  %v1970_v24 = vmov 5   ;;  %v1971_v25 = vmov 6   ;;  %v1972_v26 = vmov 0   ;;  %s2243_s11 = sld [smem:[#allocation12 + $0x1]] }
  0x42   : > { %v354_v4 = vmul.f32 %v2161_v3, %v345_v2  ;;  %v391_v8 = vmul.f32 %v2165_v7, %v346_v5  ;;  %v428_v16 = vmul.f32 %v2172_v10, %v347_v0  ;;  %1678 = vset.pattern.permute.xlu1 %v1972_v26  ;;  %v1973_v27 = vmov 1   ;;  %s2319_s8 = sld [smem:[#allocation12]]  ;;  %s1537_s10 = sshll.u32 %s2139_s19, 3 }
  0x43   : > { %v465_v22 = vmul.f32 %v2183_v20, %v348_v6  ;;  %v1974_v31 = vmov 2   ;;  %v1975_v48 = vmov 3   ;;  %vm501_vm0 = vcmask 523264   ;;  %s1552_s12 = sshll.u32 %s2046_s28, 3  ;;  %s342_s25 = scalar_lea.vmem [#allocation13], %s1537_s10 }
  0x44   : > { %357 = vrot.lane.b32.xlu2 %v354_v4, %s1967_s29  ;;  %v1976_v62 = vmov 64.0   ;;  %s1395_s16 = scalar_lea.hbm %s2472_s6, %s1552_s12  ;;  %s1397_s27 = sshll.u32 %s342_s25, 4  ;;  %s1398_s27 = int_to_ptr.vmem [resolvable:$true] %s1397_s27 }
  0x45   : > { %1695 = vrcp.f32 %v1976_v62  ;;  %s1399_s7 = sshll.u32 %s1395_s16, 4  ;;  %s1385_s9 = scalar_lea.sflag [#allocation4], %s2139_s19  ;;  %s1400_s7 = int_to_ptr.hbm [resolvable:$true] %s1399_s7 }
  0x46   : > { %s1894_s26 = sshra.s32 %s1400_s7, 4  ;;  %s1895_s26 = int_to_ptr.hbm [resolvable:$true] %s1894_s26 }
  0x47   : > { %s1896_s30 = scalar_lea.hbm %s1895_s26, 8  ;;  %p1901_p12 = scmp.lt.s32.totalorder %s1895_s26, %s2472_s6 }
  0x48   : > { %399 = vrot.lane.b32.xlu0 %v346_v5, %s1967_s29  ;;  %473 = vrot.lane.b32.xlu1 %v348_v6, %s1967_s29  ;;  %v2215_v6 = vld [vmem:[#allocation11] sm:$0xff]  ;;  %p1897_p1 = scmp.ne.s32.totalorder %s1895_s26, %s1896_s30 }
  0x4a   : > { %p1898_p3 = pnand %p1897_p1, %p2108_p13 }
  0x4b   : > { %v1696_v63 = vpop.eup %1695 }
  0x4c   : > { %v506_v0 = vmul.f32 64.0, %v1696_v63  ;;  %vm510_vm1 = vweird.f32 %v1696_v63  ;;  %p1899_p5 = pneg %p1898_p3 }
  0x4e   : > { %v507_v1 = vsub.f32 1.0, %v506_v0 }
  0x50   : > { %394 = vrot.lane.b32.xlu0 %v391_v8, %s1967_s29  ;;  %v508_v2 = vmul.f32 %v1696_v63, %v507_v1 }
  0x52   : > { %v509_v5 = vadd.f32 %v1696_v63, %v508_v2 }
  0x9e   : > { %v358_v28 = vpop.permute.xlu2 %357 }
  0x9f   : > { %v360_v30 = vsub.f32 %v354_v4, %v358_v28 }
  0xa1   : > { %v392_v33 = vadd.f32 %v391_v8, %v360_v30  ;;  %v2219_v8 = vsel %vm510_vm1, %v1696_v63, %v509_v5 }
  0xb2   : > { %v437_v12 = vpop.permute.xlu1 %436  ;;  %v363_v13 = vpop.permute.xlu0 %362 }
  0xb3   : > { %v439_v14 = vmul.f32 %v437_v12, %v2172_v10  ;;  %v365_v15 = vmul.f32 %v363_v13, %v2161_v3 }
  0xb5   : > { %442 = vrot.lane.b32.xlu0 %v439_v14, %s1967_s29  ;;  %368 = vrot.lane.b32.xlu2 %v365_v15, %s1967_s29 }
  0xba   : > { %v400_v17 = vpop.permute.xlu0 %399  ;;  %v474_v21 = vpop.permute.xlu1 %473 }
  0xbb   : > { %v402_v19 = vmul.f32 %v400_v17, %v2165_v7  ;;  %v476_v23 = vmul.f32 %v474_v21, %v2183_v20 }
  0xbd   : > { %380 = vperm.xlu0 %1674, %v2180_v18   ;;  %405 = vrot.lane.b32.xlu1 %v402_v19, %s1967_s29 }
  0xbe   : > { %431 = vrot.lane.b32.xlu2 %v428_v16, %s1967_s29 }
  0xc2   : > { %v395_v29 = vpop.permute.xlu0 %394 }
  0xc3   : > { %v397_v36 = vsub.f32 %v392_v33, %v395_v29 }
  0xc5   : > { %468 = vrot.lane.b32.xlu1 %v465_v22, %s1967_s29  ;;  %1675 = vset.pattern.permute.xlu0 %v1970_v24  ;;  %v429_v38 = vadd.f32 %v428_v16, %v397_v36 }
  0xc6   : > { %416 = vperm.xlu0 %1675, %v2180_v18   ;;  %479 = vrot.lane.b32.xlu2 %v476_v23, %s1967_s29 }
  0xcd   : > { %374 = vperm.xlu1 %1678, %v2180_v18  }
  0xce   : > { %1676 = vset.pattern.permute.xlu0 %v1971_v25  ;;  %490 = vperm.xlu2 %1677, %v2180_v18  }
  0xcf   : > { %453 = vperm.xlu0 %1676, %v2180_v18  }
  0xd5   : > { %1680 = vset.pattern.permute.xlu1 %v1974_v31 }
  0xd6   : > { %1681 = vset.pattern.permute.xlu2 %v1975_v48 }
  0xd7   : > { %1679 = vset.pattern.permute.xlu0 %v1973_v27 }
  0xd8   : > { %410 = vperm.xlu0 %1679, %v2180_v18  }
  0xe0   : > { %1683 = vset.pattern.permute.xlu0 %v1971_v25 }
 0x10f   : > { %v369_v32 = vpop.permute.xlu2 %368 }
 0x110   : > { %v371_v35 = vadd.f32 %v369_v32, %v365_v15 }
 0x112   : > { %v403_v39 = vadd.f32 %v402_v19, %v371_v35 }
 0x118   : > { %v432_v37 = vpop.permute.xlu2 %431 }
 0x119   : > { %v434_v44 = vsub.f32 %v429_v38, %v432_v37 }
 0x11b   : > { %v466_v49 = vadd.f32 %v465_v22, %v434_v44 }
 0x120   : > { %v480_v47 = vpop.permute.xlu2 %479 }
 0x127   : > { %v443_v34 = vpop.permute.xlu0 %442 }
 0x128   : > { %v491_v59 = vpop.permute.xlu2 %490 }
 0x129   : > { %v493_v60 = vmul.f32 %v491_v59, %v2183_v20 }
 0x12f   : > { %v406_v40 = vpop.permute.xlu1 %405  ;;  %v381_v41 = vpop.permute.xlu0 %380 }
 0x130   : > { %v408_v42 = vadd.f32 %v406_v40, %v403_v39  ;;  %v383_v43 = vmul.f32 %v381_v41, %v2161_v3 }
 0x132   : > { %v440_v45 = vadd.f32 %v439_v14, %v408_v42  ;;  %385 = vrot.lane.b32.xlu0 %v383_v43, %s1967_s29 }
 0x134   : > { %v445_v46 = vadd.f32 %v443_v34, %v440_v45 }
 0x136   : > { %v477_v50 = vadd.f32 %v476_v23, %v445_v46 }
 0x137   : > { %v469_v51 = vpop.permute.xlu1 %468 }
 0x138   : > { %v471_v52 = vsub.f32 %v466_v49, %v469_v51  ;;  %v482_v53 = vadd.f32 %v480_v47, %v477_v50  ;;  %v417_v54 = vpop.permute.xlu0 %416 }
 0x139   : > { %v419_v61 = vmul.f32 %v417_v54, %v2165_v7 }
 0x13a   : > { %v502_v55 = vsel %vm501_vm0, %v471_v52, 0.0  ;;  %v513_v56 = vsel %vm501_vm0, %v482_v53, 0.0 }
 0x13b   : > { %503 = vadd.xlane.f32.xlu1 %v502_v55  ;;  %514 = vadd.xlane.f32.xlu2 %v513_v56 }
 0x13f   : > { %v375_v4 = vpop.permute.xlu1 %374 }
 0x140   : > { %v377_v29 = vmul.f32 %v375_v4, %v2161_v3 }
 0x141   : > { %v454_v57 = vpop.permute.xlu0 %453 }
 0x142   : > { %v456_v58 = vmul.f32 %v454_v57, %v2172_v10 }
 0x144   : > { %458 = vrot.lane.b32.xlu0 %v456_v58, %s1967_s29 }
 0x14a   : > { %v411_v16 = vpop.permute.xlu0 %410 }
 0x14c   : > { %495 = vrot.lane.b32.xlu0 %v493_v60, %s1967_s29 }
 0x153   : > { %421 = vrot.lane.b32.xlu2 %v419_v61, %s1967_s29 }
 0x154   : > { %447 = vperm.xlu1 %1680, %v2180_v18   ;;  %546 = vperm.xlu0 %1683, %v2215_v6  }
 0x15b   : > { %484 = vperm.xlu2 %1681, %v2180_v18  }
 0x15c   : > { %1689 = vset.pattern.permute.xlu0 %v1974_v31 }
 0x163   : > { %1682 = vset.pattern.permute.xlu2 %v1972_v26 }
 0x164   : > { %541 = vperm.xlu2 %1682, %v2215_v6  }
 0x16c   : > { %1684 = vset.pattern.permute.xlu2 %v1973_v27  ;;  %v413_v27 = vmul.f32 %v411_v16, %v2165_v7 }
 0x16d   : > { %552 = vperm.xlu2 %1684, %v2215_v6  }
 0x175   : > { %1685 = vset.pattern.permute.xlu2 %v1969_v11 }
 0x176   : > { %560 = vperm.xlu2 %1685, %v2215_v6  }
 0x1a4   : > { %v386_v25 = vpop.permute.xlu0 %385 }
 0x1a5   : > { %v389_v30 = vadd.f32 %v386_v25, %v377_v29  ;;  %v388_v3 = vsub.f32 %v377_v29, %v386_v25 }
 0x1a7   : > { %v425_v32 = vadd.f32 %v413_v27, %v389_v30  ;;  %v414_v7 = vadd.f32 %v413_v27, %v388_v3  ;;  %v589_v30 = vstv %s2243_s11  ;;  %s1900_s11 = scalar_lea.hbm %s2472_s6, 16 }
 0x1a8   : > { %p1902_p8 = scmp.lt.s32.totalorder %s1900_s11, %s1896_s30 }
 0x1aa   : > { %p1903_p7 = por %p1902_p8, %p1901_p12 }
 0x1ac   : > { %p1904_p9 = pnand %p1903_p7, %p1899_p5 }
 0x1ae   : > { %v504_v12 = vpop.xlane.xlu1 %503  ;;  %v515_v13 = vpop.xlane.xlu2 %514 }
 0x1af   : > { %v512_v14 = vmul.f32 %v2219_v8, %v504_v12  ;;  %v516_v15 = vmul.f32 %v515_v13, %v2219_v8 }
 0x1b1   : > { %v517_v17 = vsub.f32 %v471_v52, %v512_v14  ;;  %v518_v18 = vsub.f32 %v482_v53, %v516_v15 }
 0x1b3   : > { %v519_v19 = vmul.f32 %v517_v17, %v517_v17  ;;  %v520_v21 = vmul.f32 %v518_v18, %v518_v18 }
 0x1b5   : > { %v521_v22 = vadd.f32 %v520_v21, %v519_v19 }
 0x1b6   : > { %v422_v28 = vpop.permute.xlu2 %421  ;;  %v459_v31 = vpop.permute.xlu0 %458 }
 0x1b7   : > { %v522_v23 = vsel %vm501_vm0, %v521_v22, 0.0  ;;  %v426_v35 = vadd.f32 %v425_v32, %v422_v28  ;;  %v424_v42 = vsub.f32 %v414_v7, %v422_v28 }
 0x1b8   : > { %523 = vadd.xlane.f32.xlu1 %v522_v23 }
 0x1be   : > { %v485_v34 = vpop.permute.xlu2 %484  ;;  %v496_v11 = vpop.permute.xlu0 %495 }
 0x1bf   : > { %v487_v38 = vmul.f32 %v485_v34, %v2183_v20 }
 0x1c6   : > { %v448_v33 = vpop.permute.xlu1 %447  ;;  %v542_v50 = vpop.permute.xlu2 %541 }
 0x1c7   : > { %v450_v36 = vmul.f32 %v448_v33, %v2172_v10  ;;  %v547_v54 = vpop.permute.xlu0 %546 }
 0x1c9   : > { %v462_v37 = vadd.f32 %v450_v36, %v426_v35  ;;  %v451_v43 = vadd.f32 %v450_v36, %v424_v42 }
 0x1cb   : > { %v463_v39 = vadd.f32 %v462_v37, %v459_v31  ;;  %v461_v44 = vsub.f32 %v451_v43, %v459_v31  ;;  %v1977_v43 = vmov 2102212464  }
 0x1cd   : > { %v499_v40 = vadd.f32 %v487_v38, %v463_v39  ;;  %v488_v45 = vadd.f32 %v487_v38, %v461_v44 }
 0x1ce   : > { %v553_v56 = vpop.permute.xlu2 %552 }
 0x1cf   : > { %v2233_v41 = vadd.f32 %v499_v40, %v496_v11  ;;  %v2237_v46 = vsub.f32 %v488_v45, %v496_v11  ;;  %v1978_v45 = vmov 920167782  }
 0x1d1   : > { %971 = vrot.lane.b32.xlu0 %v2233_v41, %s1967_s29  ;;  %v966_v10 = vsel %vm501_vm0, %v2237_v46, 0.0 }
 0x1d6   : > { %v561_v5 = vpop.permute.xlu2 %560 }
 0x1fb   : > { %967 = vadd.xlane.f32.xlu0 %v966_v10 }
 0x22b   : > { %v524_v20 = vpop.xlane.xlu1 %523 }
 0x22c   : > { %v525_v47 = vmul.f32 %v524_v20, %v2219_v8 }
 0x22e   : > { %v526_v49 = vadd.f32 1e-05, %v525_v47  ;;  %v1979_v47 = vmov 1326507024  }
 0x230   : > { %1697 = vrsqrt.f32 %v526_v49  ;;  %vm533_vm3 = vweird.f32 %v526_v49 }
 0x236   : > { %v1698_v51 = vpop.eup %1697 }
 0x237   : > { %v528_v52 = vmul.f32 %v1698_v51, %v526_v49  ;;  %vm534_vm2 = vweird.f32 %v1698_v51 }
 0x238   : > { %vm535_vm4 = vmor %vm533_vm3, %vm534_vm2 }
 0x239   : > { %v529_v53 = vmul.f32 %v1698_v51, %v528_v52  ;;  %v1981_v52 = vmov 2475754826  }
 0x23b   : > { %v530_v55 = vmul.f32 0.5, %v529_v53 }
 0x23d   : > { %v531_v57 = vsub.f32 1.5, %v530_v55  ;;  %v1982_v55 = vmov 2131351028  }
 0x23f   : > { %v532_v58 = vmul.f32 %v1698_v51, %v531_v57 }
 0x241   : > { %v536_v59 = vsel %vm535_vm4, %v1698_v51, %v532_v58 }
 0x242   : > { %v537_v60 = vmul.f32 %v536_v59, %v517_v17  ;;  %v538_v61 = vmul.f32 %v536_v59, %v518_v18 }
 0x243   : > { %v972_v62 = vpop.permute.xlu0 %971 }
 0x244   : > { %v544_v63 = vmul.f32 %v542_v50, %v537_v60  ;;  %v556_v0 = vmul.f32 %v542_v50, %v538_v61  ;;  %v549_v1 = vmul.f32 %v547_v54, %v538_v61  ;;  %v557_v2 = vmul.f32 %v547_v54, %v537_v60 }
 0x245   : > { %v974_v4 = vsel %vm501_vm0, %v972_v62, 0.0  ;;  %v1980_v50 = vmov 683565275  }
 0x246   : > { %v550_v12 = vsub.f32 %v544_v63, %v549_v1  ;;  %975 = vadd.xlane.f32.xlu2 %v974_v4  ;;  %v558_v13 = vadd.f32 %v557_v2, %v556_v0 }
 0x248   : > { %v555_v14 = vadd.f32 %v553_v56, %v550_v12  ;;  %v563_v15 = vadd.f32 %v561_v5, %v558_v13 }
 0x24a   : > { %v564_v16 = vmul.f32 %v555_v14, %v555_v14  ;;  %v565_v19 = vmul.f32 %v563_v15, %v563_v15 }
 0x24c   : > { %v566_v21 = vadd.f32 %v565_v19, %v564_v16 }
 0x24e   : > { %v567_v22 = vadd.f32 1e-30, %v566_v21 }
 0x250   : > { %1699 = vrsqrt.f32 %v567_v22  ;;  %vm574_vm6 = vweird.f32 %v567_v22 }
 0x256   : > { %v1700_v17 = vpop.eup %1699 }
 0x257   : > { %v569_v18 = vmul.f32 %v1700_v17, %v567_v22  ;;  %vm575_vm5 = vweird.f32 %v1700_v17 }
 0x258   : > { %vm576_vm7 = vmor %vm574_vm6, %vm575_vm5 }
 0x259   : > { %v570_v23 = vmul.f32 %v1700_v17, %v569_v18 }
 0x25b   : > { %v571_v25 = vmul.f32 0.5, %v570_v23 }
 0x25d   : > { %v572_v28 = vsub.f32 1.5, %v571_v25 }
 0x25f   : > { %v573_v29 = vmul.f32 %v1700_v17, %v572_v28 }
 0x261   : > { %v577_v27 = vsel %vm576_vm7, %v1700_v17, %v573_v29 }
 0x262   : > { %v2246_v31 = vmul.f32 %v577_v27, %v566_v21  ;;  %v579_v32 = vmul.f32 %v577_v27, %v563_v15 }
 0x264   : > { %v2250_v33 = vmul.f32 %v589_v30, %v579_v32 }
 0x266   : > { %v594_v34 = vand.u32 2139095040, %v2250_v33  ;;  %v591_v37 = vand.u32 2147483647, %v2250_v33  ;;  %vm593_vm5 = vcmp.lt.s32.totalorder %v2250_v33, 0 }
 0x268   : > { %v595_v35 = vshrl.u32 %v594_v34, 23  ;;  %v598_v39 = vand.u32 8388607, %v591_v37  ;;  %vm592_vm6 = vcmp.le.f32.partialorder %v591_v37, 0.7853982 }
 0x26a   : > { %v1539_v36 = vadd.s32 4294967169, %v595_v35  ;;  %v599_v7 = vor.u32 8388608, %v598_v39 }
 0x26c   : > { %v601_v38 = vadd.s32 1, %v1539_v36  ;;  %v2275_v62 = vshll.u32 %v599_v7, 8 }
 0x26e   : > { %vm602_vm8 = vcmp.gt.s32.totalorder %v601_v38, 0  ;;  %v640_v15 = vand.u32 65535, %v2275_v62  ;;  %v641_v19 = vshrl.u32 %v2275_v62, 16 }
 0x26f   : > { %v603_v11 = vsel %vm602_vm8, %v601_v38, 0 }
 0x270   : > { %v605_v40 = vand.u32 31, %v603_v11  ;;  %v2258_v42 = vshrl.u32 %v603_v11, 5 }
 0x272   : > { %v2256_v3 = vsub.s32 32, %v605_v40  ;;  %v617_v44 = vshll.u32 %v1977_v43, %v605_v40  ;;  %v620_v10 = vshll.u32 %v1978_v45, %v605_v40  ;;  %v608_v51 = vshll.u32 %v1980_v50, %v605_v40 }
 0x273   : > { %v611_v54 = vshll.u32 %v1981_v52, %v605_v40  ;;  %v614_v57 = vshll.u32 %v1982_v55, %v605_v40  ;;  %vm626_vm9 = vcmp.lt.s32.totalorder %v2258_v42, 4  ;;  %vm623_vm10 = vcmp.lt.s32.totalorder %v2258_v42, 1 }
 0x274   : > { %v618_v20 = vshrl.u32 %v1978_v45, %v2256_v3  ;;  %v621_v49 = vshrl.u32 %v1979_v47, %v2256_v3  ;;  %v609_v53 = vshrl.u32 %v1981_v52, %v2256_v3  ;;  %v612_v56 = vshrl.u32 %v1982_v55, %v2256_v3 }
 0x275   : > { %v615_v58 = vshrl.u32 %v1977_v43, %v2256_v3  ;;  %vm625_vm11 = vcmp.lt.s32.totalorder %v2258_v42, 3  ;;  %vm624_vm12 = vcmp.lt.s32.totalorder %v2258_v42, 2  ;;  %v580_v42 = vsub.f32 0.0, %v2246_v31 }
 0x276   : > { %v619_v59 = vor.u32 %v618_v20, %v617_v44  ;;  %v622_v60 = vor.u32 %v621_v49, %v620_v10  ;;  %v610_v61 = vor.u32 %v609_v53, %v608_v51  ;;  %v613_v63 = vor.u32 %v612_v56, %v611_v54 }
 0x277   : > { %v616_v0 = vor.u32 %v615_v58, %v614_v57  ;;  %v607_v51 = vshrl.u32 %v1980_v50, %v2256_v3 }
 0x278   : > { %v632_v1 = vsel %vm626_vm9, %v619_v59, 920167782  ;;  %v636_v2 = vsel %vm626_vm9, %v622_v60, 1326507024  ;;  %v631_v4 = vsel %vm623_vm10, %v610_v61, %v613_v63 }
 0x279   : > { %v633_v5 = vsel %vm625_vm11, %v616_v0, %v632_v1  ;;  %v635_v12 = vsel %vm623_vm10, %v613_v63, %v616_v0  ;;  %v637_v14 = vsel %vm625_vm11, %v619_v59, %v636_v2  ;;  %v628_v10 = vsel %vm626_vm9, %v616_v0, 2102212464 }
 0x27a   : > { %v634_v13 = vsel %vm624_vm12, %v631_v4, %v633_v5  ;;  %v638_v16 = vsel %vm624_vm12, %v635_v12, %v637_v14  ;;  %v627_v59 = vsel %vm623_vm10, %v607_v51, %v610_v61  ;;  %v629_v60 = vsel %vm625_vm11, %v613_v63, %v628_v10 }
 0x27b   : > { %v664_v21 = vand.u32 65535, %v634_v13  ;;  %v665_v22 = vshrl.u32 %v634_v13, 16  ;;  %v642_v17 = vand.u32 65535, %v638_v16  ;;  %v643_v18 = vshrl.u32 %v638_v16, 16 }
 0x27c   : > { %v630_v12 = vsel %vm624_vm12, %v627_v59, %v629_v60 }
 0x27d   : > { %v667_v23 = vmul.u32 %v665_v22, %v640_v15  ;;  %v668_v25 = vmul.u32 %v664_v21, %v641_v19  ;;  %v645_v28 = vmul.u32 %v643_v18, %v640_v15  ;;  %v646_v29 = vmul.u32 %v642_v17, %v641_v19 }
 0x27e   : > { %v666_v27 = vmul.u32 %v664_v21, %v640_v15  ;;  %v644_v34 = vmul.u32 %v642_v17, %v640_v15  ;;  %v669_v36 = vmul.u32 %v665_v22, %v641_v19  ;;  %v647_v38 = vmul.u32 %v643_v18, %v641_v19 }
 0x27f   : > { %v670_v32 = vshll.u32 %v667_v23, 16  ;;  %v648_v35 = vshll.u32 %v645_v28, 16  ;;  %v672_v39 = vshll.u32 %v668_v25, 16  ;;  %v650_v40 = vshll.u32 %v646_v29, 16 }
 0x280   : > { %v671_v57 = vshrl.u32 %v667_v23, 16  ;;  %v649_v0 = vshrl.u32 %v645_v28, 16  ;;  %v673_v2 = vshrl.u32 %v668_v25, 16  ;;  %v651_v5 = vshrl.u32 %v646_v29, 16 }
 0x281   : > { %vm674_vm13 = vc.u32 %v666_v27, %v670_v32  ;;  %v676_v11 = vadd.s32 %v670_v32, %v666_v27  ;;  %vm652_vm14 = vc.u32 %v644_v34, %v648_v35  ;;  %v654_v7 = vadd.s32 %v648_v35, %v644_v34 }
 0x282   : > { %v675_v44 = vsel %vm674_vm13, 1, %v1972_v26  ;;  %v653_v20 = vsel %vm652_vm14, 1, %v1972_v26  ;;  %v684_v19 = vmul.u32 %v2275_v62, %v630_v12  ;;  %v581_v62 = vmul.f32 1.442695, %v580_v42 }
 0x283   : > { %v677_v49 = vadd.s32 %v675_v44, %v669_v36  ;;  %vm678_vm15 = vc.u32 %v676_v11, %v672_v39  ;;  %v655_v53 = vadd.s32 %v653_v20, %v647_v38  ;;  %vm656_vm1 = vc.u32 %v654_v7, %v650_v40 }
 0x284   : > { %v679_v54 = vsel %vm678_vm15, 1, %v1972_v26  ;;  %v657_v56 = vsel %vm656_vm1, 1, %v1972_v26  ;;  %v680_v15 = vadd.s32 %v676_v11, %v672_v39  ;;  %1701 = vpow2.f32 %v581_v62 }
 0x285   : > { %v681_v58 = vadd.s32 %v679_v54, %v677_v49  ;;  %v659_v1 = vadd.s32 %v657_v56, %v655_v53  ;;  %vm734_vm13 = vweird.f32 %v2250_v33 }
 0x287   : > { %v682_v4 = vadd.s32 %v681_v58, %v671_v57  ;;  %v660_v3 = vadd.s32 %v659_v1, %v649_v0 }
 0x289   : > { %v683_v13 = vadd.s32 %v682_v4, %v673_v2  ;;  %v661_v14 = vadd.s32 %v660_v3, %v651_v5 }
 0x28a   : > { %v1702_v49 = vpop.eup %1701 }
 0x28b   : > { %v687_v16 = vadd.s32 1, %v683_v13  ;;  %vm686_vm2 = vc.u32 %v661_v14, %v680_v15  ;;  %v685_v32 = vadd.s32 %v680_v15, %v661_v14  ;;  %v583_v53 = vadd.f32 1.0, %v1702_v49 }
 0x28c   : > { %v1983_v49 = vmov 10  }
 0x28d   : > { %v688_v61 = vsel %vm686_vm2, %v687_v16, %v683_v13  ;;  %1703 = vlog2.f32 %v583_v53  ;;  %1686 = vset.pattern.permute.xlu1 %v1983_v49  ;;  %v968_v53 = vpop.xlane.xlu0 %967 }
 0x28e   : > { %v689_v21 = vadd.s32 %v688_v61, %v684_v19 }
 0x290   : > { %v690_v22 = vadd.s32 536870912, %v689_v21 }
 0x292   : > { %v691_v63 = vshrl.u32 %v690_v22, 30 }
 0x293   : > { %v1704_v12 = vpop.eup %1703 }
 0x294   : > { %v692_v17 = vshll.u32 %v691_v63, 30  ;;  %v715_v56 = vsub.s32 4, %v691_v63 }
 0x296   : > { %v693_v18 = vsub.s32 %v689_v21, %v692_v17  ;;  %v716_v0 = vsel %vm593_vm5, %v715_v56, %v691_v63  ;;  %v585_v21 = vmul.f32 0.6931472, %v1704_v12 }
 0x297   : > { %v718_v4 = vsel %vm592_vm6, 0, %v716_v0 }
 0x298   : > { %vm694_vm3 = vcmp.lt.s32.totalorder %v693_v18, 0  ;;  %v695_v23 = vsub.s32 0, %v693_v18  ;;  %v890_v16 = vadd.s32 3, %v718_v4  ;;  %v586_v42 = vadd.f32 %v585_v21, %v2246_v31 }
 0x29a   : > { %v696_v25 = vsel %vm694_vm3, %v695_v23, %v693_v18 }
 0x29b   : > { %v697_v28 = vclz %v696_v25  ;;  %v891_v25 = vand.u32 3, %v890_v16 }
 0x29d   : > { %v1540_v29 = vadd.s32 4294967294, %v697_v28  ;;  %vm892_vm10 = vcmp.lt.s32.totalorder %v891_v25, 2  ;;  %vm893_vm11 = vcmp.eq.s32.totalorder %v891_v25, 0  ;;  %vm896_vm12 = vcmp.eq.s32.totalorder %v891_v25, 2 }
 0x29f   : > { %vm1541_vm4 = vcmp.lt.s32.totalorder %v1540_v29, 0 }
 0x2a0   : > { %v700_v27 = vsel %vm1541_vm4, 0, %v1540_v29 }
 0x2a1   : > { %v701_v34 = vsub.s32 32, %v700_v27  ;;  %v705_v35 = vsub.s32 4294967266, %v700_v27  ;;  %v702_v36 = vshll.u32 %v693_v18, %v700_v27  ;;  %v735_v18 = vand.u32 3, %v718_v4 }
 0x2a2   : > { %v587_v27 = vstv %s2319_s8 }
 0x2a3   : > { %v703_v38 = vshrl.u32 %v685_v32, %v701_v34  ;;  %v706_v39 = vadd.s32 127, %v705_v35  ;;  %vm736_vm7 = vcmp.lt.s32.totalorder %v735_v18, 2  ;;  %vm737_vm8 = vcmp.eq.s32.totalorder %v735_v18, 0 }
 0x2a4   : > { %vm740_vm9 = vcmp.eq.s32.totalorder %v735_v18, 2 }
 0x2a5   : > { %v704_v11 = vor.u32 %v703_v38, %v702_v36  ;;  %v707_v40 = vshll.u32 %v706_v39, 23  ;;  %v588_v36 = vmul.f32 %v587_v27, %v586_v42  ;;  %v349_v39 = vld [vmem:[#allocation8] sm:$0xff] }
 0x2a7   : > { %v708_v7 = vor.u32 4788187, %v707_v40  ;;  %v711_v10 = vcvt.s32.f32 %v704_v11 }
 0x2a9   : > { %v709_v44 = vand.u32 2147483647, %v708_v7 }
 0x2ab   : > { %v712_v20 = vmul.f32 %v711_v10, %v709_v44 }
 0x2ad   : > { %v713_v51 = vxor.u32 2147483648, %v712_v20 }
 0x2af   : > { %v714_v54 = vsel %vm593_vm5, %v713_v51, %v712_v20  ;;  %v1984_v51 = vmov 11  }
 0x2b0   : > { %v717_v57 = vsel %vm592_vm6, %v2250_v33, %v714_v54  ;;  %1688 = vset.pattern.permute.xlu2 %v1984_v51  ;;  %v969_v33 = vmul.f32 %v968_v53, %v2219_v8 }
 0x2b1   : > { %v719_v58 = vmul.f32 %v717_v57, %v717_v57 }
 0x2b2   : > { %v978_v54 = vsub.f32 %v2237_v46, %v969_v33  ;;  %v1985_v46 = vmov 8  }
 0x2b3   : > { %v720_v59 = vmul.f32 -0.001358992, %v719_v58  ;;  %v727_v60 = vmul.f32 -0.00019511016, %v719_v58 }
 0x2b4   : > { %v980_v56 = vmul.f32 %v978_v54, %v978_v54 }
 0x2b5   : > { %v721_v1 = vadd.f32 0.041655596, %v720_v59  ;;  %v728_v2 = vadd.f32 0.008332121, %v727_v60 }
 0x2b7   : > { %v722_v5 = vmul.f32 %v721_v1, %v719_v58  ;;  %v729_v3 = vmul.f32 %v728_v2, %v719_v58 }
 0x2b9   : > { %v976_v13 = vpop.xlane.xlu2 %975  ;;  %v723_v14 = vadd.f32 -0.4999988, %v722_v5  ;;  %v730_v37 = vadd.f32 -0.16666654, %v729_v3 }
 0x2ba   : > { %v977_v15 = vmul.f32 %v976_v13, %v2219_v8 }
 0x2bb   : > { %v724_v19 = vmul.f32 %v723_v14, %v719_v58  ;;  %v731_v61 = vmul.f32 %v730_v37, %v719_v58 }
 0x2bc   : > { %v2323_v22 = vsub.f32 %v2233_v41, %v977_v15 }
 0x2bd   : > { %v725_v63 = vadd.f32 1.0, %v724_v19  ;;  %v732_v17 = vadd.f32 1.0, %v731_v61 }
 0x2be   : > { %v981_v23 = vmul.f32 %v2323_v22, %v2323_v22 }
 0x2bf   : > { %v733_v28 = vmul.f32 %v732_v17, %v717_v57  ;;  %v741_v29 = vxor.u32 2147483648, %v725_v63 }
 0x2c0   : > { %983 = vrot.lane.b32.xlu1 %v981_v23, %s1967_s29 }
 0x2c1   : > { %v738_v32 = vxor.u32 2147483648, %v733_v28  ;;  %v742_v34 = vsel %vm740_vm9, %v741_v29, %v733_v28  ;;  %v898_v62 = vsel %vm896_vm12, %v741_v29, %v733_v28 }
 0x2c3   : > { %v739_v41 = vsel %vm737_vm8, %v725_v63, %v738_v32  ;;  %v895_v35 = vsel %vm893_vm11, %v725_v63, %v738_v32 }
 0x2c4   : > { %v743_v38 = vsel %vm736_vm7, %v739_v41, %v742_v34  ;;  %v899_v31 = vsel %vm892_vm10, %v895_v35, %v898_v62 }
 0x2c5   : > { %v744_v11 = vsel %vm734_vm13, nan, %v743_v38  ;;  %v900_v40 = vsel %vm734_vm13, nan, %v899_v31 }
 0x2c6   : > { %v745_v7 = vmul.f32 %v744_v11, %v588_v36  ;;  %v901_v44 = vmul.f32 %v900_v40, %v588_v36 }
 0x2c8   : > { %904 = vrot.lane.b32.xlu1 %v349_v39, %s1967_s29  ;;  %v910_v10 = vmul.f32 %v901_v44, %v349_v39  ;;  %v902_v20 = vmul.f32 %v745_v7, %v349_v39 }
 0x2d0   : > { %1010 = vperm.xlu1 %1686, %v2215_v6  }
 0x2d8   : > { %1687 = vset.pattern.permute.xlu1 %v1968_v9 }
 0x2d9   : > { %1005 = vperm.xlu1 %1687, %v2215_v6  }
 0x2e1   : > { %1693 = vset.pattern.permute.xlu1 %v1970_v24  ;;  %v1986_v24 = vmov 9  }
 0x332   : > { %v984_v57 = vpop.permute.xlu1 %983 }
 0x333   : > { %v986_v58 = vadd.f32 %v984_v57, %v980_v56 }
 0x335   : > { %v987_v59 = vsel %vm501_vm0, %v986_v58, 0.0 }
 0x336   : > { %988 = vadd.xlane.f32.xlu2 %v987_v59 }
 0x33a   : > { %v905_v60 = vpop.permute.xlu1 %904 }
 0x33b   : > { %v907_v0 = vmul.f32 %v905_v60, %v901_v44  ;;  %v909_v1 = vmul.f32 %v905_v60, %v745_v7 }
 0x33d   : > { %v911_v2 = vadd.f32 %v910_v10, %v909_v1  ;;  %v908_v4 = vsub.f32 %v902_v20, %v907_v0 }
 0x33f   : > { %v916_v5 = vsel %vm501_vm0, %v911_v2, 0.0  ;;  %v912_v9 = vsel %vm501_vm0, %v908_v4, 0.0 }
 0x340   : > { %917 = vadd.xlane.f32.xlu2 %v916_v5  ;;  %913 = vadd.xlane.f32.xlu0 %v912_v9 }
 0x342   : > { %v1011_v62 = vpop.permute.xlu1 %1010 }
 0x34b   : > { %v1006_v31 = vpop.permute.xlu1 %1005 }
 0x358   : > { %1032 = vperm.xlu2 %1688, %v2215_v6  }
 0x360   : > { %1690 = vset.pattern.permute.xlu2 %v1985_v46 }
 0x361   : > { %948 = vperm.xlu2 %1690, %v2215_v6  }
 0x369   : > { %1692 = vset.pattern.permute.xlu2 %v1986_v24 }
 0x36a   : > { %962 = vperm.xlu2 %1692, %v2215_v6  }
 0x3a9   : > { %v989_v3 = vpop.xlane.xlu2 %988 }
 0x3aa   : > { %v990_v12 = vmul.f32 %v989_v3, %v2219_v8 }
 0x3ac   : > { %v991_v13 = vadd.f32 1e-05, %v990_v12 }
 0x3ae   : > { %1705 = vrsqrt.f32 %v991_v13  ;;  %vm998_vm15 = vweird.f32 %v991_v13 }
 0x3b3   : > { %v918_v14 = vpop.xlane.xlu2 %917  ;;  %v914_v37 = vpop.xlane.xlu0 %913 }
 0x3b4   : > { %v1706_v15 = vpop.eup %1705  ;;  %v919_v16 = vmul.f32 %v918_v14, %v2219_v8  ;;  %v915_v19 = vmul.f32 %v914_v37, %v2219_v8 }
 0x3b5   : > { %v993_v61 = vmul.f32 %v1706_v15, %v991_v13  ;;  %vm999_vm14 = vweird.f32 %v1706_v15 }
 0x3b6   : > { %v921_v21 = vsub.f32 %v911_v2, %v919_v16  ;;  %v920_v63 = vsub.f32 %v908_v4, %v915_v19  ;;  %vm1000_vm1 = vmor %vm998_vm15, %vm999_vm14 }
 0x3b7   : > { %v994_v17 = vmul.f32 %v1706_v15, %v993_v61 }
 0x3b8   : > { %v922_v18 = vmul.f32 %v920_v63, %v920_v63  ;;  %v923_v23 = vmul.f32 %v921_v21, %v921_v21 }
 0x3b9   : > { %v995_v25 = vmul.f32 0.5, %v994_v17 }
 0x3ba   : > { %v924_v28 = vadd.f32 %v923_v23, %v922_v18 }
 0x3bb   : > { %v996_v29 = vsub.f32 1.5, %v995_v25  ;;  %v1033_v40 = vpop.permute.xlu2 %1032 }
 0x3bc   : > { %v925_v42 = vsel %vm501_vm0, %v924_v28, 0.0 }
 0x3bd   : > { %v997_v32 = vmul.f32 %v1706_v15, %v996_v29  ;;  %926 = vadd.xlane.f32.xlu1 %v925_v42 }
 0x3bf   : > { %v1001_v41 = vsel %vm1000_vm1, %v1706_v15, %v997_v32 }
 0x3c0   : > { %v1002_v34 = vmul.f32 %v1001_v41, %v978_v54  ;;  %v1003_v35 = vmul.f32 %v1001_v41, %v2323_v22 }
 0x3c2   : > { %v1013_v36 = vmul.f32 %v1011_v62, %v1003_v35  ;;  %v1025_v38 = vmul.f32 %v1011_v62, %v1002_v34  ;;  %v1024_v39 = vmul.f32 %v1006_v31, %v1003_v35  ;;  %v1008_v46 = vmul.f32 %v1006_v31, %v1002_v34 }
 0x3c4   : > { %1015 = vrot.lane.b32.xlu2 %v1013_v36, %s1967_s29  ;;  %1027 = vrot.lane.b32.xlu0 %v1025_v38, %s1967_s29 }
 0x3cc   : > { %943 = vperm.xlu0 %1689, %v2215_v6  }
 0x3d4   : > { %1691 = vset.pattern.permute.xlu0 %v1975_v48 }
 0x3d5   : > { %954 = vperm.xlu0 %1691, %v2215_v6  }
 0x3d6   : > { %1020 = vperm.xlu1 %1693, %v2215_v6   ;;  %v949_v6 = vpop.permute.xlu2 %948 }
 0x3dd   : > { %1694 = vset.pattern.permute.xlu0 %v1984_v51 }
 0x3de   : > { %v963_v57 = vpop.permute.xlu2 %962 }
 0x41e   : > { %v1016_v5 = vpop.permute.xlu2 %1015 }
 0x41f   : > { %v1018_v3 = vsub.f32 %v1008_v46, %v1016_v5 }
 0x430   : > { %v927_v44 = vpop.xlane.xlu1 %926 }
 0x431   : > { %v928_v10 = vmul.f32 %v927_v44, %v2219_v8 }
 0x433   : > { %v929_v20 = vadd.f32 1e-05, %v928_v10 }
 0x435   : > { %1707 = vrsqrt.f32 %v929_v20  ;;  %vm936_vm3 = vweird.f32 %v929_v20 }
 0x436   : > { %v1028_v22 = vpop.permute.xlu0 %1027 }
 0x437   : > { %v1030_v11 = vadd.f32 %v1028_v22, %v1024_v39 }
 0x439   : > { %v1035_v7 = vadd.f32 %v1033_v40, %v1030_v11 }
 0x43b   : > { %1038 = vrot.lane.b32.xlu2 %v1035_v7, %s1967_s29  ;;  %v1708_v48 = vpop.eup %1707 }
 0x43c   : > { %v931_v49 = vmul.f32 %v1708_v48, %v929_v20  ;;  %vm937_vm2 = vweird.f32 %v1708_v48 }
 0x43d   : > { %vm938_vm4 = vmor %vm936_vm3, %vm937_vm2 }
 0x43e   : > { %v932_v53 = vmul.f32 %v1708_v48, %v931_v49  ;;  %v944_v58 = vpop.permute.xlu0 %943 }
 0x440   : > { %v933_v33 = vmul.f32 0.5, %v932_v53 }
 0x442   : > { %v934_v54 = vsub.f32 1.5, %v933_v33 }
 0x444   : > { %v935_v51 = vmul.f32 %v1708_v48, %v934_v54 }
 0x446   : > { %v939_v56 = vsel %vm938_vm4, %v1708_v48, %v935_v51 }
 0x447   : > { %v940_v59 = vmul.f32 %v939_v56, %v920_v63  ;;  %v941_v60 = vmul.f32 %v939_v56, %v921_v21  ;;  %v955_v9 = vpop.permute.xlu0 %954 }
 0x448   : > { %v1021_v24 = vpop.permute.xlu1 %1020 }
 0x449   : > { %v946_v0 = vmul.f32 %v944_v58, %v940_v59  ;;  %v951_v1 = vmul.f32 %v949_v6, %v941_v60  ;;  %v959_v8 = vmul.f32 %v949_v6, %v940_v59  ;;  %v958_v2 = vmul.f32 %v944_v58, %v941_v60 }
 0x44a   : > { %v1023_v14 = vadd.f32 %v1021_v24, %v1018_v3 }
 0x44b   : > { %v952_v4 = vsub.f32 %v946_v0, %v951_v1  ;;  %v960_v12 = vadd.f32 %v959_v8, %v958_v2 }
 0x44d   : > { %v957_v13 = vadd.f32 %v955_v9, %v952_v4  ;;  %v965_v15 = vadd.f32 %v963_v57, %v960_v12 }
 0x44f   : > { %v1036_v37 = vadd.f32 %v1023_v14, %v957_v13 }
 0x451   : > { %v1042_v61 = vmul.f32 %v1036_v37, %v1036_v37 }
 0x495   : > { %v1039_v16 = vpop.permute.xlu2 %1038 }
 0x496   : > { %v1041_v19 = vadd.f32 %v1039_v16, %v965_v15 }
 0x498   : > { %v1043_v63 = vmul.f32 %v1041_v19, %v1041_v19 }
 0x49a   : > { %v1044_v21 = vadd.f32 %v1043_v63, %v1042_v61 }
 0x49c   : > { %v1045_v17 = vadd.f32 1e-30, %v1044_v21 }
 0x49e   : > { %1709 = vrsqrt.f32 %v1045_v17  ;;  %vm1052_vm6 = vweird.f32 %v1045_v17 }
 0x4a4   : > { %v1710_v18 = vpop.eup %1709 }
 0x4a5   : > { %v1047_v23 = vmul.f32 %v1710_v18, %v1045_v17  ;;  %vm1053_vm5 = vweird.f32 %v1710_v18 }
 0x4a6   : > { %vm1054_vm7 = vmor %vm1052_vm6, %vm1053_vm5 }
 0x4a7   : > { %v1048_v25 = vmul.f32 %v1710_v18, %v1047_v23 }
 0x4a9   : > { %v1049_v28 = vmul.f32 0.5, %v1048_v25 }
 0x4ab   : > { %v1050_v29 = vsub.f32 1.5, %v1049_v28 }
 0x4ad   : > { %v1051_v42 = vmul.f32 %v1710_v18, %v1050_v29 }
 0x4af   : > { %v1055_v32 = vsel %vm1054_vm7, %v1710_v18, %v1051_v42 }
 0x4b0   : > { %v2361_v41 = vmul.f32 %v1055_v32, %v1044_v21  ;;  %v1057_v34 = vmul.f32 %v1055_v32, %v1041_v19 }
 0x4b2   : > { %v2365_v35 = vmul.f32 %v1057_v34, %v589_v30 }
 0x4b4   : > { %v1070_v62 = vand.u32 2139095040, %v2365_v35  ;;  %v1067_v38 = vand.u32 2147483647, %v2365_v35  ;;  %vm1069_vm5 = vcmp.lt.s32.totalorder %v2365_v35, 0 }
 0x4b6   : > { %v1071_v36 = vshrl.u32 %v1070_v62, 23  ;;  %v1074_v22 = vand.u32 8388607, %v1067_v38  ;;  %vm1068_vm6 = vcmp.le.f32.partialorder %v1067_v38, 0.7853982 }
 0x4b8   : > { %v1545_v31 = vadd.s32 4294967169, %v1071_v36  ;;  %v1075_v7 = vor.u32 8388608, %v1074_v22 }
 0x4ba   : > { %v1077_v39 = vadd.s32 1, %v1545_v31  ;;  %v2383_v57 = vshll.u32 %v1075_v7, 8 }
 0x4bc   : > { %vm1078_vm8 = vcmp.gt.s32.totalorder %v1077_v39, 0  ;;  %v1116_v2 = vand.u32 65535, %v2383_v57  ;;  %v1117_v5 = vshrl.u32 %v2383_v57, 16 }
 0x4bd   : > { %v1079_v11 = vsel %vm1078_vm8, %v1077_v39, 0 }
 0x4be   : > { %v1081_v40 = vand.u32 31, %v1079_v11  ;;  %v2371_v44 = vshrl.u32 %v1079_v11, 5 }
 0x4c0   : > { %v1082_v10 = vsub.s32 32, %v1081_v40  ;;  %v1084_v30 = vshll.u32 %v1980_v50, %v1081_v40  ;;  %v1087_v20 = vshll.u32 %v1981_v52, %v1081_v40  ;;  %v1090_v48 = vshll.u32 %v1982_v55, %v1081_v40 }
 0x4c1   : > { %v1093_v49 = vshll.u32 %v1977_v43, %v1081_v40  ;;  %v1096_v51 = vshll.u32 %v1978_v45, %v1081_v40  ;;  %vm1099_vm9 = vcmp.lt.s32.totalorder %v2371_v44, 1  ;;  %vm1102_vm10 = vcmp.lt.s32.totalorder %v2371_v44, 4 }
 0x4c2   : > { %v1085_v53 = vshrl.u32 %v1981_v52, %v1082_v10  ;;  %v1088_v33 = vshrl.u32 %v1982_v55, %v1082_v10  ;;  %v1091_v6 = vshrl.u32 %v1977_v43, %v1082_v10  ;;  %v1094_v54 = vshrl.u32 %v1978_v45, %v1082_v10 }
 0x4c3   : > { %v1097_v56 = vshrl.u32 %v1979_v47, %v1082_v10  ;;  %vm1101_vm11 = vcmp.lt.s32.totalorder %v2371_v44, 3  ;;  %vm1100_vm12 = vcmp.lt.s32.totalorder %v2371_v44, 2  ;;  %v1083_v62 = vshrl.u32 %v1980_v50, %v1082_v10 }
 0x4c4   : > { %v1086_v58 = vor.u32 %v1085_v53, %v1084_v30  ;;  %v1089_v59 = vor.u32 %v1088_v33, %v1087_v20  ;;  %v1092_v60 = vor.u32 %v1091_v6, %v1090_v48  ;;  %v1095_v0 = vor.u32 %v1094_v54, %v1093_v49 }
 0x4c5   : > { %v1098_v1 = vor.u32 %v1097_v56, %v1096_v51  ;;  %v1058_v44 = vsub.f32 0.0, %v2361_v41 }
 0x4c6   : > { %v1107_v43 = vsel %vm1099_vm9, %v1086_v58, %v1089_v59  ;;  %v1108_v45 = vsel %vm1102_vm10, %v1095_v0, 920167782  ;;  %v1111_v47 = vsel %vm1099_vm9, %v1089_v59, %v1092_v60  ;;  %v1104_v42 = vsel %vm1102_vm10, %v1092_v60, 2102212464 }
 0x4c7   : > { %v1109_v52 = vsel %vm1101_vm11, %v1092_v60, %v1108_v45  ;;  %v1112_v55 = vsel %vm1102_vm10, %v1098_v1, 1326507024  ;;  %v1103_v40 = vsel %vm1099_vm9, %v1083_v62, %v1086_v58  ;;  %v1105_v7 = vsel %vm1101_vm11, %v1089_v59, %v1104_v42 }
 0x4c8   : > { %v1113_v8 = vsel %vm1101_vm11, %v1095_v0, %v1112_v55  ;;  %v1110_v4 = vsel %vm1100_vm12, %v1107_v43, %v1109_v52  ;;  %v1106_v10 = vsel %vm1100_vm12, %v1103_v40, %v1105_v7 }
 0x4c9   : > { %v1114_v9 = vsel %vm1100_vm12, %v1111_v47, %v1113_v8  ;;  %v1140_v46 = vand.u32 65535, %v1110_v4  ;;  %v1141_v24 = vshrl.u32 %v1110_v4, 16  ;;  %v1160_v51 = vmul.u32 %v2383_v57, %v1106_v10 }
 0x4ca   : > { %v1118_v3 = vand.u32 65535, %v1114_v9  ;;  %v1119_v12 = vshrl.u32 %v1114_v9, 16  ;;  %v1059_v57 = vmul.f32 1.442695, %v1058_v44 }
 0x4cb   : > { %v1143_v13 = vmul.u32 %v1141_v24, %v1116_v2  ;;  %v1144_v14 = vmul.u32 %v1140_v46, %v1117_v5  ;;  %v1142_v16 = vmul.u32 %v1140_v46, %v1116_v2  ;;  %v1145_v21 = vmul.u32 %v1141_v24, %v1117_v5 }
 0x4cc   : > { %v1121_v37 = vmul.u32 %v1119_v12, %v1116_v2  ;;  %v1122_v15 = vmul.u32 %v1118_v3, %v1117_v5  ;;  %v1120_v61 = vmul.u32 %v1118_v3, %v1116_v2  ;;  %v1123_v17 = vmul.u32 %v1119_v12, %v1117_v5 }
 0x4cd   : > { %v1146_v19 = vshll.u32 %v1143_v13, 16  ;;  %v1148_v18 = vshll.u32 %v1144_v14, 16  ;;  %v1147_v22 = vshrl.u32 %v1143_v13, 16  ;;  %v1149_v48 = vshrl.u32 %v1144_v14, 16 }
 0x4ce   : > { %v1124_v63 = vshll.u32 %v1121_v37, 16  ;;  %v1126_v25 = vshll.u32 %v1122_v15, 16  ;;  %v1125_v30 = vshrl.u32 %v1121_v37, 16  ;;  %v1127_v53 = vshrl.u32 %v1122_v15, 16 }
 0x4cf   : > { %vm1150_vm13 = vc.u32 %v1142_v16, %v1146_v19  ;;  %v1152_v23 = vadd.s32 %v1146_v19, %v1142_v16  ;;  %1711 = vpow2.f32 %v1059_v57 }
 0x4d0   : > { %vm1128_vm14 = vc.u32 %v1120_v61, %v1124_v63  ;;  %v1130_v28 = vadd.s32 %v1124_v63, %v1120_v61  ;;  %v1151_v29 = vsel %vm1150_vm13, 1, %v1972_v26  ;;  %vm1210_vm13 = vweird.f32 %v2365_v35 }
 0x4d1   : > { %v1129_v32 = vsel %vm1128_vm14, 1, %v1972_v26  ;;  %v1153_v34 = vadd.s32 %v1151_v29, %v1145_v21  ;;  %vm1154_vm15 = vc.u32 %v1152_v23, %v1148_v18 }
 0x4d2   : > { %v1131_v36 = vadd.s32 %v1129_v32, %v1123_v17  ;;  %vm1132_vm1 = vc.u32 %v1130_v28, %v1126_v25  ;;  %v1155_v31 = vsel %vm1154_vm15, 1, %v1972_v26 }
 0x4d3   : > { %v1133_v39 = vsel %vm1132_vm1, 1, %v1972_v26  ;;  %v1157_v11 = vadd.s32 %v1155_v31, %v1153_v34  ;;  %v1156_v26 = vadd.s32 %v1152_v23, %v1148_v18 }
 0x4d4   : > { %v1135_v20 = vadd.s32 %v1133_v39, %v1131_v36 }
 0x4d5   : > { %v1158_v49 = vadd.s32 %v1157_v11, %v1147_v22  ;;  %v1712_v15 = vpop.eup %1711 }
 0x4d6   : > { %v1136_v50 = vadd.s32 %v1135_v20, %v1125_v30  ;;  %v1061_v19 = vadd.f32 1.0, %v1712_v15 }
 0x4d7   : > { %v1159_v33 = vadd.s32 %v1158_v49, %v1149_v48 }
 0x4d8   : > { %v1137_v6 = vadd.s32 %v1136_v50, %v1127_v53  ;;  %1713 = vlog2.f32 %v1061_v19 }
 0x4d9   : > { %v1163_v54 = vadd.s32 1, %v1159_v33 }
 0x4da   : > { %vm1162_vm2 = vc.u32 %v1137_v6, %v1156_v26  ;;  %v1161_v8 = vadd.s32 %v1156_v26, %v1137_v6 }
 0x4db   : > { %v1164_v56 = vsel %vm1162_vm2, %v1163_v54, %v1159_v33 }
 0x4dc   : > { %v1165_v58 = vadd.s32 %v1164_v56, %v1160_v51 }
 0x4de   : > { %v1166_v60 = vadd.s32 536870912, %v1165_v58  ;;  %v1714_v62 = vpop.eup %1713 }
 0x4df   : > { %v1063_v11 = vmul.f32 0.6931472, %v1714_v62 }
 0x4e0   : > { %v1167_v59 = vshrl.u32 %v1166_v60, 30 }
 0x4e1   : > { %v1064_v53 = vadd.f32 %v1063_v11, %v2361_v41 }
 0x4e2   : > { %v1168_v0 = vshll.u32 %v1167_v59, 30  ;;  %v1191_v63 = vsub.s32 4, %v1167_v59 }
 0x4e3   : > { %v1065_v54 = vmul.f32 %v1064_v53, %v587_v27 }
 0x4e4   : > { %v1169_v1 = vsub.s32 %v1165_v58, %v1168_v0  ;;  %v1192_v25 = vsel %vm1069_vm5, %v1191_v63, %v1167_v59 }
 0x4e5   : > { %v1194_v42 = vsel %vm1068_vm6, 0, %v1192_v25 }
 0x4e6   : > { %vm1170_vm3 = vcmp.lt.s32.totalorder %v1169_v1, 0  ;;  %v1171_v43 = vsub.s32 0, %v1169_v1  ;;  %v1366_v39 = vadd.s32 3, %v1194_v42  ;;  %v1211_v40 = vand.u32 3, %v1194_v42 }
 0x4e8   : > { %v1172_v45 = vsel %vm1170_vm3, %v1171_v43, %v1169_v1  ;;  %v1367_v20 = vand.u32 3, %v1366_v39  ;;  %vm1216_vm7 = vcmp.eq.s32.totalorder %v1211_v40, 2  ;;  %vm1212_vm8 = vcmp.lt.s32.totalorder %v1211_v40, 2 }
 0x4e9   : > { %v1173_v47 = vclz %v1172_v45  ;;  %vm1213_vm9 = vcmp.eq.s32.totalorder %v1211_v40, 0 }
 0x4ea   : > { %vm1369_vm10 = vcmp.eq.s32.totalorder %v1367_v20, 0  ;;  %vm1372_vm11 = vcmp.eq.s32.totalorder %v1367_v20, 2  ;;  %vm1368_vm12 = vcmp.lt.s32.totalorder %v1367_v20, 2 }
 0x4eb   : > { %v1546_v52 = vadd.s32 4294967294, %v1173_v47 }
 0x4ed   : > { %vm1547_vm4 = vcmp.lt.s32.totalorder %v1546_v52, 0 }
 0x4ee   : > { %v1176_v55 = vsel %vm1547_vm4, 0, %v1546_v52 }
 0x4ef   : > { %v1177_v2 = vsub.s32 32, %v1176_v55  ;;  %v1181_v4 = vsub.s32 4294967266, %v1176_v55  ;;  %v1178_v5 = vshll.u32 %v1169_v1, %v1176_v55 }
 0x4f1   : > { %v1179_v9 = vshrl.u32 %v1161_v8, %v1177_v2  ;;  %v1182_v46 = vadd.s32 127, %v1181_v4 }
 0x4f3   : > { %v1180_v24 = vor.u32 %v1179_v9, %v1178_v5  ;;  %v1183_v3 = vshll.u32 %v1182_v46, 23 }
 0x4f5   : > { %v1184_v12 = vor.u32 4788187, %v1183_v3  ;;  %v1187_v14 = vcvt.s32.f32 %v1180_v24 }
 0x4f7   : > { %v1185_v13 = vand.u32 2147483647, %v1184_v12 }
 0x4f9   : > { %v1188_v37 = vmul.f32 %v1187_v14, %v1185_v13 }
 0x4fb   : > { %v1189_v16 = vxor.u32 2147483648, %v1188_v37 }
 0x4fd   : > { %v1190_v61 = vsel %vm1069_vm5, %v1189_v16, %v1188_v37 }
 0x4fe   : > { %v1193_v21 = vsel %vm1068_vm6, %v2365_v35, %v1190_v61 }
 0x4ff   : > { %v1195_v17 = vmul.f32 %v1193_v21, %v1193_v21 }
 0x501   : > { %v1196_v18 = vmul.f32 -0.001358992, %v1195_v17  ;;  %v1203_v23 = vmul.f32 -0.00019511016, %v1195_v17 }
 0x503   : > { %v1197_v28 = vadd.f32 0.041655596, %v1196_v18  ;;  %v1204_v29 = vadd.f32 0.008332121, %v1203_v23 }
 0x505   : > { %v1198_v32 = vmul.f32 %v1197_v28, %v1195_v17  ;;  %v1205_v34 = vmul.f32 %v1204_v29, %v1195_v17 }
 0x507   : > { %v1199_v36 = vadd.f32 -0.4999988, %v1198_v32  ;;  %v1206_v31 = vadd.f32 -0.16666654, %v1205_v34 }
 0x509   : > { %v1200_v22 = vmul.f32 %v1199_v36, %v1195_v17  ;;  %v1207_v38 = vmul.f32 %v1206_v31, %v1195_v17 }
 0x50b   : > { %v1201_v7 = vadd.f32 1.0, %v1200_v22  ;;  %v1208_v30 = vadd.f32 1.0, %v1207_v38 }
 0x50d   : > { %v1209_v48 = vmul.f32 %v1208_v30, %v1193_v21  ;;  %v1217_v49 = vxor.u32 2147483648, %v1201_v7 }
 0x50f   : > { %v1214_v50 = vxor.u32 2147483648, %v1209_v48  ;;  %v1218_v10 = vsel %vm1216_vm7, %v1217_v49, %v1209_v48  ;;  %v1374_v26 = vsel %vm1372_vm11, %v1217_v49, %v1209_v48 }
 0x511   : > { %v1215_v33 = vsel %vm1213_vm9, %v1201_v7, %v1214_v50  ;;  %v1371_v6 = vsel %vm1369_vm10, %v1201_v7, %v1214_v50 }
 0x512   : > { %v1219_v51 = vsel %vm1212_vm8, %v1215_v33, %v1218_v10  ;;  %v1375_v56 = vsel %vm1368_vm12, %v1371_v6, %v1374_v26 }
 0x513   : > { %v1220_v41 = vsel %vm1210_vm13, nan, %v1219_v51  ;;  %v1376_v58 = vsel %vm1210_vm13, nan, %v1375_v56 }
 0x514   : > { %v1377_v60 = vmul.f32 %v1376_v58, %v1065_v54  ;;  %v1221_v59 = vmul.f32 %v1220_v41, %v1065_v54 }
 0x516   : > { %1379 = vrot.lane.b32.xlu0 %v1377_v60, %s1967_s29 }
 0x588   : > { %v1380_v27 = vpop.permute.xlu0 %1379 }
 0x589   : > { %v1382_v35 = vsel %vm501_vm0, %v1221_v59, %v1380_v27 }
 0x58a   : > { %1383 = vst [vmem:[%s342_s25] sm:$0xff] %v1382_v35 }
 0x58b   : > { %1907 = shalt.err (!%p1904_p9)
}
 0x58c   : > { %1577 = dma.vmem_to_hbm [thread:$0]  (%p2108_p13), %s1398_s27, 128, %s1400_s7, %s1385_s9  }
 0x58d PF: > { %s1411_s19 = sand.u32 1, %s1946_s21   ;;  %p2479_p10 = scmp.ge.s32.totalorder %s1958_s24, 2 }
 0x58e   : > { %s1412_s12 = scalar_lea.sflag [#allocation4], %s1411_s19 }
 0x58f   : > { %p1600_p11 = pnand %p2479_p10, %p2113_p4 }
 0x591   : > { %p1601_p0 = pneg %p1600_p11 }
 0x593   : > { %1941 = dma.done.wait (%p1601_p0), %s1412_s12, 128  }
 0x594   : > { %1943 = vsyncadd (%p1601_p0), %s1412_s12, 4294967168  ;;  %p22_p2 = scmp.ge.s32.totalorder %s2088_s14, 4   ;;  %s2480_s21 = smov %s1950_s22 }
 0x595   : > { %s2481_s22 = smov %s1954_s23  ;;  %s2482_s23 = smov %s2100_s17 }
 0x596   : > { %s2483_s24 = smov %s2088_s14  ;;  %24 = sbr.rel (!%p22_p2) target bundleno = 8 (0x8), region = 110 }
 0x59b   :  { %1418 = vsyncpa [#allocation3], 1 }
 0x59c   :  { %1420 = vsyncpa [#allocation3 + $0x1], 1 }
 0x59d   :  { %1421 = vsyncpa [#allocation7], 1 }
 0x59e   :  { %1422 = vsyncpa [#allocation10], 1 }
 0x59f   :  { %1423 = vsyncpa [#allocation4], 1 }
 0x5a0   :  { %1425 = vsyncpa [#allocation4 + $0x1], 1 }
 0x5a1   :  { %1426 = vsyncpa [#allocation5], 1 }
 0x5a2   :  { %1428 = vsyncpa [#allocation5 + $0x1], 1 }

</bundles_post_ra>
